<compile_context>
chip_gen: v6e
topology: v6e:2x2x1
jax: 0.10.0
libtpu: 0.0.40
codegen_flags: <defaults>
</compile_context>

<pallas_src>
import functools
import numpy as np
import jax
import jax.numpy as jnp
from jax.experimental import pallas as pl

try:  # use scipy's firwin when available (exact match to the PyTorch reference)
    from scipy import signal as _scipy_signal
except ImportError:  # fall back to the numpy re-implementation below
    _scipy_signal = None

# ---------------------------------------------------------------------------
# Static configuration (mirrors SynthesisLayer.__init__ / init_size_hyper).
# ---------------------------------------------------------------------------
W_DIM = 8
IN_CHANNELS = 4
OUT_CHANNELS = 4
IN_SIZE = 16
OUT_SIZE = 16
IN_SR = OUT_SR = MAX_SR = 16
IN_CUTOFF = OUT_CUTOFF = 8.0
IN_HALF_WIDTH = OUT_HALF_WIDTH = 2.0
CONV_KERNEL = 3
FILTER_SIZE = 6
LRELU_UPSAMPLING = 2
CONV_CLAMP = 256.0
IS_TORGB = False  # TODO(synk): is_torgb branch (1-tap filters, no depthwise weight-gen path) is not exercised here.
HIDDEN = min(IN_CHANNELS, IN_CHANNELS)
BATCH = 2

# MXU operand dtype (review: bf16 operands + f32 accumulation on v5e/v6e/v7x).
# Set to jnp.float32 for bit-exact f32 reference semantics.
MXU_DTYPE = jnp.bfloat16


def _kaiser_beta(a):
    if a > 50.0:
        return 0.1102 * (a - 8.7)
    if a > 21.0:
        return 0.5842 * (a - 21.0) ** 0.4 + 0.07886 * (a - 21.0)
    return 0.0


def design_lowpass_filter(numtaps, cutoff, width, fs):
    # scipy.signal.firwin(..., width=..., fs=...) (Kaiser window, scale=True).
    assert numtaps >= 1
    if numtaps == 1:
        return None
    if _scipy_signal is not None:
        return np.asarray(
            _scipy_signal.firwin(numtaps=numtaps, cutoff=cutoff, width=width, fs=fs),
            dtype=np.float32)
    # numpy fallback, matches firwin's kaiser_atten/kaiser_beta + DC normalization.
    nyq = 0.5 * fs
    cutoff_n = cutoff / nyq
    atten = 2.285 * (numtaps - 1) * np.pi * (width / nyq) + 7.95  # kaiser_atten
    beta = _kaiser_beta(atten)
    win = np.kaiser(numtaps, beta)
    m = np.arange(numtaps) - 0.5 * (numtaps - 1)
    h = cutoff_n * np.sinc(cutoff_n * m) * win
    h = h / np.sum(h)
    return h.astype(np.float32)


TMP_SR = max(IN_SR, OUT_SR) * (1 if IS_TORGB else LRELU_UPSAMPLING)
UP_FACTOR = int(np.rint(TMP_SR / IN_SR))
UP_TAPS = FILTER_SIZE * UP_FACTOR if (UP_FACTOR > 1 and not IS_TORGB) else 1
DOWN_FACTOR = int(np.rint(TMP_SR / OUT_SR))
DOWN_TAPS = FILTER_SIZE * DOWN_FACTOR if (DOWN_FACTOR > 1 and not IS_TORGB) else 1
UP_FILTER = design_lowpass_filter(UP_TAPS, IN_CUTOFF, IN_HALF_WIDTH * 2, TMP_SR)
DOWN_FILTER = design_lowpass_filter(DOWN_TAPS, OUT_CUTOFF, OUT_HALF_WIDTH * 2, TMP_SR)

# weight_gen (DepthwiseSynthesisKernel) geometry + its low-pass filter.
WG_INIT_SIZE = CONV_KERNEL
WG_IN_SIZE = (WG_INIT_SIZE + 1) // 2 * 4 * (MAX_SR // IN_SR)                   # 8
WG_DENSITY = 1
WG_OUT_SIZE = WG_DENSITY * WG_INIT_SIZE + (WG_DENSITY * WG_INIT_SIZE - 1) % 2  # 3
WG_NUM_TAPS = WG_IN_SIZE - WG_OUT_SIZE * 2 + 2                                 # 4
WG_HALFWIDTH = OUT_HALF_WIDTH * 2
WG_LOW_FILTER = design_lowpass_filter(WG_NUM_TAPS, OUT_CUTOFF, WG_HALFWIDTH * 2,
                                      OUT_CUTOFF * 2 ** 1.1)
WG_GAUSS_X = (np.arange(WG_IN_SIZE) - (WG_IN_SIZE - 1) / 2.0).astype(np.float32)[None, :]

CONV_K = 1 if IS_TORGB else WG_OUT_SIZE                                        # 3

_pad_total = (OUT_SIZE - 1) * DOWN_FACTOR + 1
_pad_total -= (IN_SIZE + CONV_K - 1) * UP_FACTOR
_pad_total += UP_TAPS + DOWN_TAPS - 2
PAD_LO = int((_pad_total + UP_FACTOR) // 2)
PAD_HI = int(_pad_total - PAD_LO)

# Effective per-pass separable filters used by filtered_lrelu:
#  flipped (cross-correlation -> true convolution) and per-pass gain `up`.
FU_EFF = UP_FILTER[::-1].astype(np.float32) * np.float32(UP_FACTOR)
FD_EFF = DOWN_FILTER[::-1].astype(np.float32)
# NOTE: ver5 SynthesisLayer really passes gain=sqrt(1/2), slope=0.2 (non-torgb).
LRELU_GAIN = 1.0 if IS_TORGB else float(np.sqrt(1.0 / 2.0))
LRELU_SLOPE = 1.0 if IS_TORGB else 0.2

# ---------------------------------------------------------------------------
# Static resampling operators (host-side numpy).
#   U_MAT: [N_UP, N_MID] folds zero-insertion x2, (PAD_LO,PAD_HI) padding and
#          the 12-tap (pre-flipped, gain=up) up filter (polyphase).
#   D_MAT: [OUT_SIZE, N_UP] folds the 12-tap down filter and the ::2 subsample.
# ---------------------------------------------------------------------------
N_MID = IN_SIZE + CONV_K - 1                                            # 18
N_UP = N_MID * UP_FACTOR + PAD_LO + PAD_HI - UP_TAPS + 1                # 42
assert (N_UP - DOWN_TAPS) // DOWN_FACTOR + 1 == OUT_SIZE

U_MAT = np.zeros((N_UP, N_MID), np.float32)
for _o in range(N_UP):
    for _j in range(N_MID):
        _k = UP_FACTOR * _j + PAD_LO - _o
        if 0 <= _k < UP_TAPS:
            U_MAT[_o, _j] = FU_EFF[_k]

D_MAT = np.zeros((OUT_SIZE, N_UP), np.float32)
for _o in range(OUT_SIZE):
    for _j in range(N_UP):
        _k = _j - DOWN_FACTOR * _o
        if 0 <= _k < DOWN_TAPS:
            D_MAT[_o, _j] = FD_EFF[_k]

U_BD = np.kron(np.eye(OUT_CHANNELS, dtype=np.float32), U_MAT)           # [168, 72]
D_BD = np.kron(np.eye(OUT_CHANNELS, dtype=np.float32), D_MAT)           # [64, 168]

# Banded basis for the generated depthwise 3x1 (vertical) conv; the
# conv_kernel-1 zero padding of the original is folded into this operator.
VT_BASIS = np.zeros((CONV_K, N_MID, IN_SIZE), np.float32)   # left-multiply (V)
for _k in range(CONV_K):
    for _r in range(IN_SIZE):
        _h = _r - _k + (CONV_K - 1)
        if 0 <= _h < N_MID:
            VT_BASIS[_k, _h, _r] = 1.0

ROWS_IN3 = CONV_K * IN_CHANNELS * IN_SIZE     # 192  (tap-stacked input rows)
ROWS_UP = OUT_CHANNELS * N_UP                 # 168
ROWS_OUT = OUT_CHANNELS * OUT_SIZE            # 64


# ---------------------------------------------------------------------------
# Single fused Pallas kernel: one grid step for the whole batch.
# Every block equals the full array (tiny working set, all resident in VMEM).
# ---------------------------------------------------------------------------
def _synthesis_fused_kernel(x3_ref, lr3_ref, sin3_ref, m13_ref, utb_ref,
                            sout_ref, bup_ref, dtb_ref, dbd_ref, o_ref,
                            *, slope, gain, clamp):
    f32 = jnp.float32
    mxu = lr3_ref.dtype  # MXU operand dtype (bf16 by default, f32 accumulation)

    # (1) lr 1x1 conv (/sqrt(Cin)) applied to the three tap-shifted input
    #     copies in ONE matmul:  LR3 = kron(I3, kron(lr_w/sqrt(Cin), I16)).
    lr3 = jnp.dot(lr3_ref[...], x3_ref[...], preferred_element_type=f32)      # [192, B*18]

    # (2) per-(batch, in-channel) modulation input scale s_norm (VPU).
    y3 = lr3 * sin3_ref[...]

    # (3) generated 1x3 depthwise taps (column scales, tap-summed), generated
    #     3x1 depthwise conv, modulated 1x1 mix and the vertical up-FIR are
    #     all pre-folded into M1_3 = [U_bd @ kron(w_norm,I18) @ V_bd] * taps.
    z = jnp.dot(m13_ref[...], y3.astype(mxu), preferred_element_type=f32)     # [168, B*18]

    # (4) horizontal up-FIR (zero-insert x2 + padding + 12 taps folded into
    #     U^T, block-diagonal per batch lane block).
    z = jnp.dot(z.astype(mxu), utb_ref[...], preferred_element_type=f32)      # [168, B*42]

    # (5) demodulation * input_gain scale and bias, both pushed through the
    #     up-FIR in glue (per-out-channel / per-batch constants commute).
    z = z * sout_ref[...] + bup_ref[...]

    # (6) leaky relu, gain, clamp (f32, VPU).
    z = jnp.where(z >= 0.0, z, z * slope) * gain
    z = jnp.clip(z, -clamp, clamp)

    # (7) horizontal then vertical down-FIR with the ::2 subsample folded in.
    z = jnp.dot(z.astype(mxu), dtb_ref[...], preferred_element_type=f32)      # [168, B*16]
    z = jnp.dot(dbd_ref[...], z.astype(mxu), preferred_element_type=f32)      # [64,  B*16]

    # (8) final nonlinearity 1.5*x*exp(-x^2/10).
    o_ref[...] = 1.5 * z * jnp.exp(z * z * (-0.1))


def fused_synthesis_pallas(x3, lr3, sin3, m13, utb, sout, bup, dtb, dbd):
    out_rows, out_cols = dbd.shape[0], dtb.shape[1]
    kern = functools.partial(_synthesis_fused_kernel,
                             slope=LRELU_SLOPE, gain=LRELU_GAIN,
                             clamp=float(CONV_CLAMP))
    operands = (x3, lr3, sin3, m13, utb, sout, bup, dtb, dbd)

    def _full(a):
        return pl.BlockSpec(a.shape, lambda i: (0,) * a.ndim)

    return pl.pallas_call(
        kern,
        grid=(1,),  # single step: batch is packed on the lane axis
        in_specs=[_full(a) for a in operands],
        out_specs=pl.BlockSpec((out_rows, out_cols), lambda i: (0, 0)),
        out_shape=jax.ShapeDtypeStruct((out_rows, out_cols), jnp.float32),
    )(*operands)


# ---------------------------------------------------------------------------
# Parameter-sized glue (tiny math on [C,8]-like tensors, left to XLA).
# ---------------------------------------------------------------------------
def weight_gen_forward(params):
    pts = (jnp.arange(WG_IN_SIZE, dtype=jnp.float32) - (WG_IN_SIZE - 1) / 2.0) * (2.0 / (WG_IN_SIZE + 1))
    x_grid = params['freqs'][:, 0:1] * pts[None, :] + params['phases'][:, None]
    y_grid = params['freqs'][:, 1:2] * pts[None, :] + params['phases'][:, None]
    low = jnp.asarray(WG_LOW_FILTER)
    gx = jnp.asarray(WG_GAUSS_X)

    def sample_weight(grid, coeff):
        s = jnp.sin(grid * (2.0 * np.pi)) * np.exp(-1.0 / (2.0 * WG_DENSITY ** 2))
        wt = jnp.einsum('cg,ic->ig', s, coeff) / np.sqrt(HIDDEN)
        wt = wt - jnp.mean(wt)                                   # global mean (matches torch)
        wt = wt * jax.lax.rsqrt(jnp.mean(wt * wt, axis=0, keepdims=True) + 1e-8)
        gs = 1.0 + params['gauss_sigma'] ** 2 / 5.0
        wt = wt * jnp.exp(-(gx * gx) / (2.0 * gs))
        out_len = WG_IN_SIZE - WG_NUM_TAPS + 1
        cols = [jnp.sum(wt[:, t:t + WG_NUM_TAPS] * low[None, :], axis=1) for t in range(out_len)]
        wt = jnp.stack(cols, axis=1)
        return wt[:, ::2]                                        # [in_dim, CONV_K]

    return (sample_weight(x_grid, params['hz_outdim']),
            sample_weight(y_grid, params['vt_outdim']))


def modulation_factors(style_w, styles, input_gain):
    """modulated_conv2d (1x1, demodulate=True) decomposed into
       input scale s_norm[b,i] -> shared mix w_norm[o,i] -> output scale."""
    w_n = style_w * jax.lax.rsqrt(jnp.mean(style_w * style_w, axis=1, keepdims=True))
    s_n = styles * jax.lax.rsqrt(jnp.mean(styles * styles))      # global mean (matches torch)
    ww = w_n[None, :, :] * s_n[:, None, :]                       # [B, O, I]
    dcoef = jax.lax.rsqrt(jnp.sum(ww * ww, axis=2) + 1e-8)       # [B, O]
    return w_n, s_n, dcoef * input_gain


def synthesis_layer_forward(params, x, w):
    B = x.shape[0]
    x = x.astype(jnp.float32)
    hp = jax.lax.Precision.HIGHEST

    # ---- affine (FullyConnectedLayer), weight_gen, modulation factors -------
    styles = (jnp.dot(w.astype(jnp.float32),
                      params['affine_w'].T * (1.0 / np.sqrt(W_DIM)), precision=hp)
              + params['affine_b'][None, :])
    hz_w, vt_w = weight_gen_forward(params)                                   # [Cin,3] each
    input_gain = jax.lax.rsqrt(params['magnitude_ema'])
    w_n, s_n, out_scale = modulation_factors(params['style_weight'], styles, input_gain)

    # ---- batch-independent left operators (folded once in glue) -------------
    lr_big = jnp.kron(params['lr_weight'] * (1.0 / np.sqrt(IN_CHANNELS)),
                      jnp.eye(IN_SIZE, dtype=jnp.float32))                    # [64, 64]
    lr3 = jnp.kron(jnp.eye(CONV_K, dtype=jnp.float32), lr_big)                # [192, 192]
    vc = jnp.einsum('ck,khr->chr', vt_w, jnp.asarray(VT_BASIS))               # [C, 18, 16]
    v_bd = (jnp.eye(IN_CHANNELS, dtype=jnp.float32)[:, None, :, None]
            * vc[:, :, None, :]).reshape(IN_CHANNELS * N_MID, IN_CHANNELS * IN_SIZE)
    w_big = jnp.kron(w_n, jnp.eye(N_MID, dtype=jnp.float32))                  # [72, 72]
    m1 = jnp.matmul(jnp.asarray(U_BD),
                    jnp.matmul(w_big, v_bd, precision=hp), precision=hp)      # [168, 64]
    # fold the generated horizontal taps + tap-sum over the 3 shifted copies
    m1_3 = jnp.concatenate(
        [m1 * jnp.repeat(hz_w[:, k], IN_SIZE)[None, :] for k in range(CONV_K)],
        axis=1)                                                               # [168, 192]

    # ---- per-batch elementwise slabs (scales + bias through the up-FIR) -----
    sin_cb = jnp.repeat(jnp.repeat(s_n.T, IN_SIZE, axis=0), N_MID, axis=1)    # [64, B*18]
    sin3 = jnp.tile(sin_cb, (CONV_K, 1))                                      # [192, B*18]
    sout = jnp.repeat(jnp.repeat(out_scale.T, N_UP, axis=0), N_UP, axis=1)    # [168, B*42]
    u_rowsum = np.sum(U_MAT, axis=1)                                          # [42] static
    bup = ((jnp.repeat(params['bias'], N_UP)
            * jnp.asarray(np.tile(u_rowsum, OUT_CHANNELS)))[:, None]
           * jnp.asarray(np.tile(u_rowsum, B))[None, :])                      # [168, B*42]

    # ---- batch-lane-packed, tap-stacked input slab (layout only) ------------
    xk = [jnp.pad(x, ((0, 0), (0, 0), (0, 0), (CONV_K - 1 - k, k))) for k in range(CONV_K)]
    x3 = jnp.stack(xk, axis=0).transpose(0, 2, 3, 1, 4).reshape(
        ROWS_IN3, B * N_MID)                                                  # [192, B*18]

    # static per-batch-lane-block resampling operators
    ut_b = np.kron(np.eye(B, dtype=np.float32), U_MAT.T)                      # [B*18, B*42]
    dt_b = np.kron(np.eye(B, dtype=np.float32), D_MAT.T)                      # [B*42, B*16]

    out_slab = fused_synthesis_pallas(
        x3.astype(MXU_DTYPE), lr3.astype(MXU_DTYPE), sin3, m1_3.astype(MXU_DTYPE),
        jnp.asarray(ut_b, dtype=MXU_DTYPE), sout, bup,
        jnp.asarray(dt_b, dtype=MXU_DTYPE), jnp.asarray(D_BD, dtype=MXU_DTYPE))

    # [Cout*16, B*16] -> [B, Cout, 16, 16]  (free wrapper-side layout)
    return out_slab.reshape(OUT_CHANNELS, OUT_SIZE, B, OUT_SIZE).transpose(2, 0, 1, 3)


if __name__ == "__main__":
    key = jax.random.PRNGKey(0)
    ks = jax.random.split(key, 9)
    freqs = jax.random.normal(ks[3], (HIDDEN, 2), jnp.float32)
    radii = jnp.sqrt(jnp.sum(freqs * freqs, axis=1, keepdims=True))
    freqs = freqs / (radii * jnp.exp(radii * radii) ** 0.25) * 8.0
    params = dict(
        affine_w=jax.random.normal(ks[0], (IN_CHANNELS, W_DIM), jnp.float32),
        affine_b=jnp.ones((IN_CHANNELS,), jnp.float32),                # bias_init=1
        lr_weight=jax.random.normal(ks[1], (IN_CHANNELS, IN_CHANNELS), jnp.float32),
        style_weight=jax.random.normal(ks[2], (OUT_CHANNELS, IN_CHANNELS), jnp.float32),
        bias=jnp.zeros((OUT_CHANNELS,), jnp.float32),
        magnitude_ema=jnp.ones((), jnp.float32),
        freqs=freqs,
        phases=jax.random.uniform(ks[4], (HIDDEN,), jnp.float32) - 0.5,
        hz_outdim=jax.random.normal(ks[5], (IN_CHANNELS, HIDDEN), jnp.float32),
        vt_outdim=jax.random.normal(ks[6], (IN_CHANNELS, HIDDEN), jnp.float32),
        gauss_sigma=jnp.ones((), jnp.float32),
    )
    x = jax.random.normal(ks[7], (BATCH, IN_CHANNELS, IN_SIZE, IN_SIZE), jnp.float32)
    w = jax.random.normal(ks[8], (BATCH, W_DIM), jnp.float32)

    fwd = jax.jit(synthesis_layer_forward)
    out = jax.block_until_ready(fwd(params, x, w))
    assert out.shape == (BATCH, OUT_CHANNELS, OUT_SIZE, OUT_SIZE), out.shape
    assert bool(jnp.all(jnp.isfinite(out)))
    print("KERNEL_OK")
</pallas_src>

<mosaic_0001>
module attributes {stable_mosaic.version = 11 : i64} {
  func.func @_synthesis_fused_kernel(%arg0: i32, %arg1: memref<192x36xbf16, #tpu.memory_space<vmem>>, %arg2: memref<192x192xbf16, #tpu.memory_space<vmem>>, %arg3: memref<192x36xf32, #tpu.memory_space<vmem>>, %arg4: memref<168x192xbf16, #tpu.memory_space<vmem>>, %arg5: memref<36x84xbf16, #tpu.memory_space<vmem>>, %arg6: memref<168x84xf32, #tpu.memory_space<vmem>>, %arg7: memref<168x84xf32, #tpu.memory_space<vmem>>, %arg8: memref<84x32xbf16, #tpu.memory_space<vmem>>, %arg9: memref<64x168xbf16, #tpu.memory_space<vmem>>, %arg10: memref<64x32xf32, #tpu.memory_space<vmem>>) attributes {dimension_semantics = [#tpu.dimension_semantics<arbitrary>], iteration_bounds = array<i64: 1>, scalar_prefetch = 0 : i64, scratch_operands = 0 : i64, tpu.core_type = #tpu.core_type<tc>, window_params = [{pipeline_mode = #tpu.pipeline_mode<synchronous>, transform_indices = @transform_0, window_bounds = array<i64: 192, 36>}, {pipeline_mode = #tpu.pipeline_mode<synchronous>, transform_indices = @transform_1, window_bounds = array<i64: 192, 192>}, {pipeline_mode = #tpu.pipeline_mode<synchronous>, transform_indices = @transform_2, window_bounds = array<i64: 192, 36>}, {pipeline_mode = #tpu.pipeline_mode<synchronous>, transform_indices = @transform_3, window_bounds = array<i64: 168, 192>}, {pipeline_mode = #tpu.pipeline_mode<synchronous>, transform_indices = @transform_4, window_bounds = array<i64: 36, 84>}, {pipeline_mode = #tpu.pipeline_mode<synchronous>, transform_indices = @transform_5, window_bounds = array<i64: 168, 84>}, {pipeline_mode = #tpu.pipeline_mode<synchronous>, transform_indices = @transform_6, window_bounds = array<i64: 168, 84>}, {pipeline_mode = #tpu.pipeline_mode<synchronous>, transform_indices = @transform_7, window_bounds = array<i64: 84, 32>}, {pipeline_mode = #tpu.pipeline_mode<synchronous>, transform_indices = @transform_8, window_bounds = array<i64: 64, 168>}, {pipeline_mode = #tpu.pipeline_mode<synchronous>, transform_indices = @transform_9, window_bounds = array<i64: 64, 32>}]} {
    %c0 = arith.constant 0 : index
    %c0_0 = arith.constant 0 : index
    %0 = vector.load %arg2[%c0, %c0_0] : memref<192x192xbf16, #tpu.memory_space<vmem>>, vector<192x192xbf16>
    %c0_1 = arith.constant 0 : index
    %c0_2 = arith.constant 0 : index
    %1 = vector.load %arg1[%c0_1, %c0_2] : memref<192x36xbf16, #tpu.memory_space<vmem>>, vector<192x36xbf16>
    %cst = arith.constant dense<0.000000e+00> : vector<192x36xf32>
    %2 = tpu.matmul %0, %1, %cst {dimension_numbers = #tpu.dot_dimension_numbers<[1], [0], [0], [1], [0, 0, 1, 1], [], []>} : vector<192x192xbf16>, vector<192x36xbf16>, vector<192x36xf32> -> vector<192x36xf32>
    %c0_3 = arith.constant 0 : index
    %c0_4 = arith.constant 0 : index
    %3 = vector.load %arg3[%c0_3, %c0_4] : memref<192x36xf32, #tpu.memory_space<vmem>>, vector<192x36xf32>
    %4 = arith.mulf %2, %3 : vector<192x36xf32>
    %c0_5 = arith.constant 0 : index
    %c0_6 = arith.constant 0 : index
    %5 = vector.load %arg4[%c0_5, %c0_6] : memref<168x192xbf16, #tpu.memory_space<vmem>>, vector<168x192xbf16>
    %6 = arith.truncf %4 : vector<192x36xf32> to vector<192x36xbf16>
    %cst_7 = arith.constant dense<0.000000e+00> : vector<168x36xf32>
    %7 = tpu.matmul %5, %6, %cst_7 {dimension_numbers = #tpu.dot_dimension_numbers<[1], [0], [0], [1], [0, 0, 1, 1], [], []>} : vector<168x192xbf16>, vector<192x36xbf16>, vector<168x36xf32> -> vector<168x36xf32>
    %8 = arith.truncf %7 : vector<168x36xf32> to vector<168x36xbf16>
    %c0_8 = arith.constant 0 : index
    %c0_9 = arith.constant 0 : index
    %9 = vector.load %arg5[%c0_8, %c0_9] : memref<36x84xbf16, #tpu.memory_space<vmem>>, vector<36x84xbf16>
    %cst_10 = arith.constant dense<0.000000e+00> : vector<168x84xf32>
    %10 = tpu.matmul %8, %9, %cst_10 {dimension_numbers = #tpu.dot_dimension_numbers<[1], [0], [0], [1], [0, 0, 1, 1], [], []>} : vector<168x36xbf16>, vector<36x84xbf16>, vector<168x84xf32> -> vector<168x84xf32>
    %c0_11 = arith.constant 0 : index
    %c0_12 = arith.constant 0 : index
    %11 = vector.load %arg6[%c0_11, %c0_12] : memref<168x84xf32, #tpu.memory_space<vmem>>, vector<168x84xf32>
    %12 = arith.mulf %10, %11 : vector<168x84xf32>
    %c0_13 = arith.constant 0 : index
    %c0_14 = arith.constant 0 : index
    %13 = vector.load %arg7[%c0_13, %c0_14] : memref<168x84xf32, #tpu.memory_space<vmem>>, vector<168x84xf32>
    %14 = arith.addf %12, %13 : vector<168x84xf32>
    %cst_15 = arith.constant 0.000000e+00 : f32
    %15 = vector.broadcast %cst_15 : f32 to vector<168x84xf32>
    %16 = arith.cmpf oge, %14, %15 : vector<168x84xf32>
    %cst_16 = arith.constant 2.000000e-01 : f32
    %17 = vector.broadcast %cst_16 : f32 to vector<168x84xf32>
    %18 = arith.mulf %14, %17 : vector<168x84xf32>
    %19 = arith.select %16, %14, %18 : vector<168x84xi1>, vector<168x84xf32>
    %cst_17 = arith.constant 0.707106769 : f32
    %20 = vector.broadcast %cst_17 : f32 to vector<168x84xf32>
    %21 = arith.mulf %19, %20 : vector<168x84xf32>
    %cst_18 = arith.constant -2.560000e+02 : f32
    %cst_19 = arith.constant 2.560000e+02 : f32
    %22 = vector.broadcast %cst_18 : f32 to vector<168x84xf32>
    %23 = arith.maximumf %22, %21 : vector<168x84xf32>
    %24 = vector.broadcast %cst_19 : f32 to vector<168x84xf32>
    %25 = arith.minimumf %24, %23 : vector<168x84xf32>
    %26 = arith.truncf %25 : vector<168x84xf32> to vector<168x84xbf16>
    %c0_20 = arith.constant 0 : index
    %c0_21 = arith.constant 0 : index
    %27 = vector.load %arg8[%c0_20, %c0_21] : memref<84x32xbf16, #tpu.memory_space<vmem>>, vector<84x32xbf16>
    %cst_22 = arith.constant dense<0.000000e+00> : vector<168x32xf32>
    %28 = tpu.matmul %26, %27, %cst_22 {dimension_numbers = #tpu.dot_dimension_numbers<[1], [0], [0], [1], [0, 0, 1, 1], [], []>} : vector<168x84xbf16>, vector<84x32xbf16>, vector<168x32xf32> -> vector<168x32xf32>
    %c0_23 = arith.constant 0 : index
    %c0_24 = arith.constant 0 : index
    %29 = vector.load %arg9[%c0_23, %c0_24] : memref<64x168xbf16, #tpu.memory_space<vmem>>, vector<64x168xbf16>
    %30 = arith.truncf %28 : vector<168x32xf32> to vector<168x32xbf16>
    %cst_25 = arith.constant dense<0.000000e+00> : vector<64x32xf32>
    %31 = tpu.matmul %29, %30, %cst_25 {dimension_numbers = #tpu.dot_dimension_numbers<[1], [0], [0], [1], [0, 0, 1, 1], [], []>} : vector<64x168xbf16>, vector<168x32xbf16>, vector<64x32xf32> -> vector<64x32xf32>
    %cst_26 = arith.constant 1.500000e+00 : f32
    %32 = vector.broadcast %cst_26 : f32 to vector<64x32xf32>
    %33 = arith.mulf %32, %31 : vector<64x32xf32>
    %34 = arith.mulf %31, %31 : vector<64x32xf32>
    %cst_27 = arith.constant -1.000000e-01 : f32
    %35 = vector.broadcast %cst_27 : f32 to vector<64x32xf32>
    %36 = arith.mulf %34, %35 : vector<64x32xf32>
    %37 = math.exp %36 : vector<64x32xf32>
    %38 = arith.mulf %33, %37 : vector<64x32xf32>
    %c0_28 = arith.constant 0 : index
    %c0_29 = arith.constant 0 : index
    %39 = vector.load %arg10[%c0_28, %c0_29] : memref<64x32xf32, #tpu.memory_space<vmem>>, vector<64x32xf32>
    tpu.vector_store %arg10[%c0_28, %c0_29], %38 {strides = array<i32>} : memref<64x32xf32, #tpu.memory_space<vmem>>, vector<64x32xf32>,
    return
  }
  func.func @transform_0(%arg0: i32) -> (i32, i32) {
    %c0_i32 = arith.constant 0 : i32
    %c0_i32_0 = arith.constant 0 : i32
    %c0_i32_1 = arith.constant 0 : i32
    return %c0_i32, %c0_i32_0 : i32, i32
  }
  func.func @transform_1(%arg0: i32) -> (i32, i32) {
    %c0_i32 = arith.constant 0 : i32
    %c0_i32_0 = arith.constant 0 : i32
    %c0_i32_1 = arith.constant 0 : i32
    return %c0_i32, %c0_i32_0 : i32, i32
  }
  func.func @transform_2(%arg0: i32) -> (i32, i32) {
    %c0_i32 = arith.constant 0 : i32
    %c0_i32_0 = arith.constant 0 : i32
    %c0_i32_1 = arith.constant 0 : i32
    return %c0_i32, %c0_i32_0 : i32, i32
  }
  func.func @transform_3(%arg0: i32) -> (i32, i32) {
    %c0_i32 = arith.constant 0 : i32
    %c0_i32_0 = arith.constant 0 : i32
    %c0_i32_1 = arith.constant 0 : i32
    return %c0_i32, %c0_i32_0 : i32, i32
  }
  func.func @transform_4(%arg0: i32) -> (i32, i32) {
    %c0_i32 = arith.constant 0 : i32
    %c0_i32_0 = arith.constant 0 : i32
    %c0_i32_1 = arith.constant 0 : i32
    return %c0_i32, %c0_i32_0 : i32, i32
  }
  func.func @transform_5(%arg0: i32) -> (i32, i32) {
    %c0_i32 = arith.constant 0 : i32
    %c0_i32_0 = arith.constant 0 : i32
    %c0_i32_1 = arith.constant 0 : i32
    return %c0_i32, %c0_i32_0 : i32, i32
  }
  func.func @transform_6(%arg0: i32) -> (i32, i32) {
    %c0_i32 = arith.constant 0 : i32
    %c0_i32_0 = arith.constant 0 : i32
    %c0_i32_1 = arith.constant 0 : i32
    return %c0_i32, %c0_i32_0 : i32, i32
  }
  func.func @transform_7(%arg0: i32) -> (i32, i32) {
    %c0_i32 = arith.constant 0 : i32
    %c0_i32_0 = arith.constant 0 : i32
    %c0_i32_1 = arith.constant 0 : i32
    return %c0_i32, %c0_i32_0 : i32, i32
  }
  func.func @transform_8(%arg0: i32) -> (i32, i32) {
    %c0_i32 = arith.constant 0 : i32
    %c0_i32_0 = arith.constant 0 : i32
    %c0_i32_1 = arith.constant 0 : i32
    return %c0_i32, %c0_i32_0 : i32, i32
  }
  func.func @transform_9(%arg0: i32) -> (i32, i32) {
    %c0_i32 = arith.constant 0 : i32
    %c0_i32_0 = arith.constant 0 : i32
    %c0_i32_1 = arith.constant 0 : i32
    return %c0_i32, %c0_i32_0 : i32, i32
  }
}

</mosaic_0001>

<bundles_post_ra>
// kernel: mul.277
= control target key start
LH: loop header
LB: loop body
LE: loop exit
PB: predicated region body
PF: predicated region fallthrough
CT: control target
= control target key end

     0   :  { %vm8_vm0 = vcmask 130048   ;;  %s40_s8 = smov 16   ;;  %s41_s9 = smov 32   ;;  %vm14_vm1 = vcmask 523648   ;;  %vm20_vm2 = vcmask 392448   ;;  %vm26_vm3 = vcmask 261248   ;;  %s58_s0 = inlined_call_operand.vmem [shape: f32[4,16], index: 0, kind: input, shape index: {}]   ;;  %s59_s1 = inlined_call_operand.vmem [shape: f32[64], index: 1, kind: output, shape index: {}]  }
   0x1   :  { %v5_v0 = vld [vmem:[%s58_s0] sm:$0xf]  ;;  %s39_s0 = smov 48  }
   0x2   :  { %6 = vst [vmem:[#allocation1] sm:$0xf] %v5_v0 }
   0x9   :  { %v11_v1 = vld [vmem:[#allocation1 + $0x3] sm:$0x1]   ;;  %v23_v2 = vld [vmem:[#allocation1 + $0x1] sm:$0x1]   ;;  %v7_v3 = vld [vmem:[#allocation1] sm:$0x1]  }
   0xa   :  { %12 = vrot.lane.b32.xlu0 %v11_v1, %s39_s0  ;;  %24 = vrot.lane.b32.xlu1 %v23_v2, %s40_s8  ;;  %v17_v4 = vld [vmem:[#allocation1 + $0x2] sm:$0x1]   ;;  %9 = vst.msk [vmem:[#allocation0] sm:$0x1] %vm8_vm0, %v7_v3  }
   0xe   :  { %18 = vrot.lane.b32.xlu0 %v17_v4, %s41_s9 }
  0x7c   :  { %v13_v5 = vpop.permute.xlu0 %12   ;;  %v25_v6 = vpop.permute.xlu1 %24  }
  0x7d   :  { %15 = vst.msk [vmem:[#allocation0] sm:$0x1] %vm14_vm1, %v13_v5  }
  0x80   :  { %v19_v7 = vpop.permute.xlu0 %18  }
  0x81   :  { %21 = vst.msk [vmem:[#allocation0] sm:$0x1] %vm20_vm2, %v19_v7  }
  0x82   :  { %27 = vst.msk [vmem:[#allocation0] sm:$0x1] %vm26_vm3, %v25_v6  }
  0x89   :  { %v32_v8 = vld [vmem:[#allocation0] sm:$0x1] }
  0x8a   :  { %35 = vst [vmem:[%s59_s1] sm:$0x1] %v32_v8 }

// kernel: synthesis_layer_forward.1
= control target key start
LH: loop header
LB: loop body
LE: loop exit
PB: predicated region body
PF: predicated region fallthrough
CT: control target
= control target key end

     0   :  { %v1990_v0 = vmov 0   ;;  %vm261_vm0 = vcmask 523264   ;;  %vm822_vm1 = vcmask 1041408   ;;  %vm1992_vm2 = vmmov 0   ;;  %s2683_s0 = inlined_call_operand.vmem [shape: bf16[192,36], index: 0, kind: input, shape index: {}]   ;;  %s2684_s1 = inlined_call_operand.vmem [shape: bf16[192,192], index: 1, kind: input, shape index: {}]   ;;  %s2685_s3 = inlined_call_operand.vmem [shape: bf16[168,192], index: 3, kind: input, shape index: {}]   ;;  %s2686_s2 = inlined_call_operand.vmem [shape: f32[192,36], index: 2, kind: input, shape index: {}]   ;;  %s2687_s4 = inlined_call_operand.vmem [shape: bf16[36,84], index: 4, kind: input, shape index: {}]   ;;  %s2688_s7 = inlined_call_operand.vmem [shape: bf16[84,32], index: 7, kind: input, shape index: {}]   ;;  %s2689_s5 = inlined_call_operand.vmem [shape: f32[168,84], index: 5, kind: input, shape index: {}]   ;;  %s2690_s6 = inlined_call_operand.vmem [shape: f32[168,84], index: 6, kind: input, shape index: {}]   ;;  %s2691_s8 = inlined_call_operand.vmem [shape: bf16[64,168], index: 8, kind: input, shape index: {}]   ;;  %s2692_s9 = inlined_call_operand.vmem [shape: f32[64,32], index: 9, kind: output, shape index: {}]  }
   0x1   :  { %298 = vmatprep.subr.bf16.mxu0 %v1990_v0  ;;  %v1873_v1 = vld [vmem:[%s2683_s0 + $0x38] sm:$0xff]   ;;  %637 = vmatprep.subr.bf16.mxu1 %v1990_v0  ;;  %v1874_v2 = vld [vmem:[%s2683_s0 + $0x30] sm:$0xff]   ;;  %v1875_v3 = vld [vmem:[%s2683_s0 + $0x28] sm:$0xff]   ;;  %vm788_vm3 = vcmask 293888   ;;  %vm1211_vm7 = vcmask 687104  }
   0x2   :  { %299 = vmatpush1.bf16.msra.mxu0 %v1873_v1  ;;  %v1876_v4 = vld [vmem:[%s2683_s0 + $0x20] sm:$0xff]   ;;  %v1877_v6 = vld [vmem:[%s2683_s0 + $0x18] sm:$0xff]   ;;  %v1878_v7 = vld [vmem:[%s2683_s0 + $0x10] sm:$0xff]  }
   0x3   :  { %300 = vmatprep.subr.bf16.mxu0 %v1990_v0  ;;  %v1887_v5 = vld [vmem:[%s2684_s1 + $0x4] ss:$8 sps:$4 sm:$0xff]   ;;  %v1881_v10 = vld [vmem:[%s2683_s0 + $0x58] sm:$0xff]   ;;  %v1882_v11 = vld [vmem:[%s2683_s0 + $0x50] sm:$0xff]  }
   0x4   :  { %1602 = vmatprep.mubr.msk.bf16.mxu0 %vm261_vm0, %v1887_v5  ;;  %v1879_v8 = vld [vmem:[%s2683_s0 + $0x8] sm:$0xff]   ;;  %v1880_v9 = vld [vmem:[%s2683_s0] sm:$0xff]   ;;  %v1888_v15 = vld [vmem:[%s2684_s1 + $0x14] ss:$8 sps:$4 sm:$0xff]  }
   0x5   :  { %v1883_v12 = vld [vmem:[%s2683_s0 + $0x48] sm:$0xff]   ;;  %v1884_v13 = vld [vmem:[%s2683_s0 + $0x40] sm:$0xff]   ;;  %v1890_v16 = vld [vmem:[%s2684_s1 + $0x10] ss:$8 sps:$4 sm:$0xff]  }
   0x6   :  { %301 = vmatpush1.bf16.msra.mxu0 %v1874_v2  ;;  %v1885_v14 = vld [vmem:[%s2684_s1] ss:$8 sps:$4 sm:$0xff]   ;;  %v1891_v17 = vld [vmem:[%s2684_s1 + $0x24] ss:$8 sps:$4 sm:$0xff]   ;;  %v1894_v19 = vld [vmem:[%s2684_s1 + $0x34] ss:$8 sps:$4 sm:$0xff]  }
   0x7   :  { %302 = vmatprep.subr.bf16.mxu0 %v1990_v0  ;;  %v1893_v18 = vld [vmem:[%s2684_s1 + $0x20] ss:$8 sps:$4 sm:$0xff]   ;;  %v1896_v20 = vld [vmem:[%s2684_s1 + $0x30] ss:$8 sps:$4 sm:$0xff]   ;;  %v1897_v21 = vld [vmem:[%s2684_s1 + $0x44] ss:$8 sps:$4 sm:$0xff]  }
   0x8   :  { %v1899_v22 = vld [vmem:[%s2684_s1 + $0x40] ss:$8 sps:$4 sm:$0xff]   ;;  %v1900_v23 = vld [vmem:[%s2684_s1 + $0x54] ss:$8 sps:$4 sm:$0xff]   ;;  %v1902_v24 = vld [vmem:[%s2684_s1 + $0x50] ss:$8 sps:$4 sm:$0xff]  }
   0x9   :  { %v1903_v25 = vld [vmem:[%s2684_s1 + $0x64] ss:$8 sps:$4 sm:$0xff]   ;;  %v1905_v26 = vld [vmem:[%s2684_s1 + $0x60] ss:$8 sps:$4 sm:$0xff]   ;;  %v1906_v27 = vld [vmem:[%s2684_s1 + $0x74] ss:$8 sps:$4 sm:$0xff]  }
   0xa   :  { %303 = vmatpush1.bf16.msra.mxu0 %v1875_v3  ;;  %v1908_v28 = vld [vmem:[%s2684_s1 + $0x70] ss:$8 sps:$4 sm:$0xff]   ;;  %v1909_v29 = vld [vmem:[%s2684_s1 + $0x84] ss:$8 sps:$4 sm:$0xff]   ;;  %v1911_v30 = vld [vmem:[%s2684_s1 + $0x80] ss:$8 sps:$4 sm:$0xff]  }
   0xb   :  { %304 = vmatprep.subr.bf16.mxu0 %v1990_v0  ;;  %v1912_v31 = vld [vmem:[%s2684_s1 + $0x94] ss:$8 sps:$4 sm:$0xff]   ;;  %v1914_v32 = vld [vmem:[%s2684_s1 + $0x90] ss:$8 sps:$4 sm:$0xff]   ;;  %v1915_v33 = vld [vmem:[%s2684_s1 + $0xa4] ss:$8 sps:$4 sm:$0xff]  }
   0xc   :  { %v1917_v34 = vld [vmem:[%s2684_s1 + $0xa0] ss:$8 sps:$4 sm:$0xff]   ;;  %v1918_v35 = vld [vmem:[%s2684_s1 + $0xb4] ss:$8 sps:$4 sm:$0xff]   ;;  %v1920_v36 = vld [vmem:[%s2684_s1 + $0xb0] ss:$8 sps:$4 sm:$0xff]  }
   0xd   :  { %v1923_v37 = vld [vmem:[%s2685_s3 + $0x4] ss:$8 sps:$4 sm:$0xff]   ;;  %v429_v48 = vld [vmem:[%s2686_s2 + $0x10] sm:$0xff]  ;;  %v430_v50 = vld [vmem:[%s2686_s2 + $0x18] sm:$0xff] }
   0xe   :  { %305 = vmatpush1.bf16.msra.mxu0 %v1876_v4  ;;  %1636 = vmatprep.mubr.msk.bf16.mxu1 %vm261_vm0, %v1923_v37  ;;  %v427_v39 = vld [vmem:[%s2686_s2] sm:$0xff]  ;;  %v428_v41 = vld [vmem:[%s2686_s2 + $0x8] sm:$0xff] }
   0xf   :  { %306 = vmatprep.subr.bf16.mxu0 %v1990_v0 }
  0x12   :  { %307 = vmatpush1.bf16.msra.mxu0 %v1877_v6 }
  0x13   :  { %308 = vmatprep.subr.bf16.mxu0 %v1990_v0 }
  0x16   :  { %309 = vmatpush1.bf16.msra.mxu0 %v1878_v7 }
  0x17   :  { %310 = vmatprep.subr.bf16.mxu0 %v1990_v0 }
  0x1a   :  { %311 = vmatpush1.bf16.msra.mxu0 %v1879_v8 }
  0x1b   :  { %312 = vmatprep.subr.bf16.mxu0 %v1990_v0 }
  0x1e   :  { %313 = vmatpush1.bf16.msra.mxu0 %v1880_v9 }
  0x1f   :  { %322 = vmatprep.subr.bf16.mxu0 %v1990_v0 }
  0x22   :  { %323 = vmatpush2.bf16.msra.mxu0 %v1881_v10 }
  0x23   :  { %324 = vmatprep.subr.bf16.mxu0 %v1990_v0 }
  0x26   :  { %325 = vmatpush2.bf16.msra.mxu0 %v1882_v11 }
  0x27   :  { %326 = vmatprep.subr.bf16.mxu0 %v1990_v0 }
  0x2a   :  { %327 = vmatpush2.bf16.msra.mxu0 %v1883_v12 }
  0x2b   :  { %328 = vmatprep.subr.bf16.mxu0 %v1990_v0 }
  0x2e   :  { %329 = vmatpush2.bf16.msra.mxu0 %v1884_v13 }
  0x31   :  { %331 = vmatmul.mubr.bf16.vlgmr.msra.gmra.mxu0 %v1885_v14  ;;  %v441_v14 = vld [vmem:[%s2686_s2 + $0x70] sm:$0xff] }
  0x32   :  { %1603 = vmatprep.mubr.msk.bf16.mxu0 %vm261_vm0, %v1888_v15 }
  0x39   :  { %339 = vmatmul.mubr.bf16.gmra.mxu0 %v1890_v16  ;;  %v442_v16 = vld [vmem:[%s2686_s2 + $0x78] sm:$0xff] }
  0x3a   :  { %1604 = vmatprep.mubr.msk.bf16.mxu0 %vm261_vm0, %v1891_v17  ;;  %v440_v17 = vld [vmem:[%s2686_s2 + $0x68] sm:$0xff] }
  0x41   :  { %347 = vmatmul.mubr.bf16.gmra.mxu0 %v1893_v18 }
  0x42   :  { %1605 = vmatprep.mubr.msk.bf16.mxu0 %vm261_vm0, %v1894_v19 }
  0x49   :  { %355 = vmatmul.mubr.bf16.gmra.mxu0 %v1896_v20 }
  0x4a   :  { %1606 = vmatprep.mubr.msk.bf16.mxu0 %vm261_vm0, %v1897_v21  ;;  %v439_v21 = vld [vmem:[%s2686_s2 + $0x60] sm:$0xff] }
  0x51   :  { %363 = vmatmul.mubr.bf16.gmra.mxu0 %v1899_v22 }
  0x52   :  { %1607 = vmatprep.mubr.msk.bf16.mxu0 %vm261_vm0, %v1900_v23 }
  0x59   :  { %371 = vmatmul.mubr.bf16.gmra.mxu0 %v1902_v24 }
  0x5a   :  { %1608 = vmatprep.mubr.msk.bf16.mxu0 %vm261_vm0, %v1903_v25  ;;  %v438_v25 = vld [vmem:[%s2686_s2 + $0x58] sm:$0xff] }
  0x61   :  { %379 = vmatmul.mubr.bf16.gmra.mxu0 %v1905_v26 }
  0x62   :  { %1609 = vmatprep.mubr.msk.bf16.mxu0 %vm261_vm0, %v1906_v27  ;;  %v437_v27 = vld [vmem:[%s2686_s2 + $0x50] sm:$0xff] }
  0x69   :  { %387 = vmatmul.mubr.bf16.gmra.mxu0 %v1908_v28 }
  0x6a   :  { %1610 = vmatprep.mubr.msk.bf16.mxu0 %vm261_vm0, %v1909_v29  ;;  %v1991_v29 = vmov 0.0  }
  0x6b   :  { %1792 = vmatprep.subr.bf16.mxu0 %v1991_v29 }
  0x71   :  { %395 = vmatmul.mubr.bf16.gmra.mxu0 %v1911_v30 }
  0x72   :  { %1611 = vmatprep.mubr.msk.bf16.mxu0 %vm261_vm0, %v1912_v31 }
  0x79   :  { %403 = vmatmul.mubr.bf16.gmra.mxu0 %v1914_v32 }
  0x7a   :  { %1612 = vmatprep.mubr.msk.bf16.mxu0 %vm261_vm0, %v1915_v33  ;;  %v436_v33 = vld [vmem:[%s2686_s2 + $0x48] sm:$0xff] }
  0x81   :  { %411 = vmatmul.mubr.bf16.gmra.mxu0 %v1917_v34 }
  0x82   :  { %1613 = vmatprep.mubr.msk.bf16.mxu0 %vm261_vm0, %v1918_v35 }
  0x89   :  { %419 = vmatmul.mubr.bf16.gmra.mxu0 %v1920_v36  ;;  %v435_v36 = vld [vmem:[%s2686_s2 + $0x40] sm:$0xff] }
  0x8a   :  { %1804 = vmatprep.mubr.msk.bf16.mxu0 %vm1992_vm2, %v1991_v29 }
  0xf1   :  { %v332_v38 = vpop.f32.mrf.mxu0 }
  0xf2   :  { %v2186_v43 = vmul.f32 %v427_v39, %v332_v38 }
  0xf3   :  { %v334_v40 = vpop.f32.mrf.mxu0 }
  0xf4   :  { %v434_v40 = vld [vmem:[%s2686_s2 + $0x38] sm:$0xff] }
  0xf5   :  { %v335_v42 = vpop.f32.mrf.mxu0 }
  0xf6   :  { %v2188_v44 = vmul.f32 %v428_v41, %v335_v42 }
  0xf7   :  { %v337_v45 = vpop.f32.mrf.mxu0 }
  0xf8   :  { %v496_v46 = vpack.c.bf16 %v2188_v44, %v2186_v43  ;;  %v433_v45 = vld [vmem:[%s2686_s2 + $0x30] sm:$0xff] }
  0xf9   :  { %v340_v47 = vpop.f32.mrf.mxu0  ;;  %v445_v43 = vld [vmem:[%s2686_s2 + $0x90] sm:$0xff] }
  0xfa   :  { %v2198_v52 = vmul.f32 %v429_v48, %v340_v47 }
  0xfb   :  { %v342_v49 = vpop.f32.mrf.mxu0 }
  0xfd   :  { %v343_v51 = vpop.f32.mrf.mxu0 }
  0xfe   :  { %v2200_v53 = vmul.f32 %v430_v50, %v343_v51  ;;  %v432_v50 = vld [vmem:[%s2686_s2 + $0x28] sm:$0xff] }
  0xff   :  { %v345_v54 = vpop.f32.mrf.mxu0 }
 0x100   :  { %v497_v55 = vpack.c.bf16 %v2200_v53, %v2198_v52  ;;  %v447_v52 = vld [vmem:[%s2686_s2 + $0xa0] sm:$0xff] }
 0x101   :  { %v2204_v56 = vpop.f32.mrf.mxu0 }
 0x103   :  { %v350_v57 = vpop.f32.mrf.mxu0 }
 0x104   :  { %v431_v57 = vld [vmem:[%s2686_s2 + $0x20] sm:$0xff] }
 0x105   :  { %v2206_v58 = vpop.f32.mrf.mxu0 }
 0x107   :  { %v353_v59 = vpop.f32.mrf.mxu0 }
 0x109   :  { %v356_v60 = vpop.f32.mrf.mxu0 }
 0x10a   :  { %v457_v54 = vmul.f32 %v433_v45, %v356_v60  ;;  %v495_v45 = vld [vmem:[%s2685_s3 + $0xa0] sm:$0xff] }
 0x10b   :  { %v358_v61 = vpop.f32.mrf.mxu0 }
 0x10c   :  { %v456_v61 = vmul.f32 %v432_v50, %v2206_v58  ;;  %v449_v58 = vld [vmem:[%s2686_s2 + $0xb0] sm:$0xff]  ;;  %v1634_v50 = vcombine.low %v495_v45, %v495_v45 }
 0x10d   :  { %v359_v62 = vpop.f32.mrf.mxu0 }
 0x10e   :  { %v458_v48 = vmul.f32 %v434_v40, %v359_v62  ;;  %v455_v62 = vmul.f32 %v431_v57, %v2204_v56  ;;  %v1945_v40 = vld [vmem:[%s2685_s3 + $0x84] ss:$8 sps:$4 sm:$0xff]  }
 0x10f   :  { %v361_v63 = vpop.f32.mrf.mxu0  ;;  %v1957_v57 = vld [vmem:[%s2688_s7 + $0x20] sm:$0xff]  }
 0x110   :  { %v499_v63 = vpack.c.bf16 %v458_v48, %v457_v54  ;;  %v1950_v48 = vld [vmem:[%s2685_s3 + $0x90] ss:$8 sps:$4 sm:$0xff]  }
 0x111   :  { %v364_v1 = vpop.f32.mrf.mxu0 }
 0x112   :  { %v459_v42 = vmul.f32 %v435_v36, %v364_v1  ;;  %v1939_v36 = vld [vmem:[%s2685_s3 + $0x64] ss:$8 sps:$4 sm:$0xff]  }
 0x113   :  { %v366_v2 = vpop.f32.mrf.mxu0 }
 0x115   :  { %v367_v3 = vpop.f32.mrf.mxu0 }
 0x116   :  { %v460_v38 = vmul.f32 %v436_v33, %v367_v3  ;;  %v498_v3 = vpack.c.bf16 %v456_v61, %v455_v62  ;;  %v1935_v33 = vld [vmem:[%s2685_s3 + $0x40] ss:$8 sps:$4 sm:$0xff]  }
 0x117   :  { %v369_v4 = vpop.f32.mrf.mxu0 }
 0x118   :  { %v500_v49 = vpack.c.bf16 %v460_v38, %v459_v42  ;;  %v1942_v38 = vld [vmem:[%s2685_s3 + $0x74] ss:$8 sps:$4 sm:$0xff]  }
 0x119   :  { %v372_v5 = vpop.f32.mrf.mxu0  ;;  %v1948_v42 = vld [vmem:[%s2685_s3 + $0x94] ss:$8 sps:$4 sm:$0xff]  }
 0x11a   :  { %v461_v35 = vmul.f32 %v437_v27, %v372_v5  ;;  %v1927_v27 = vld [vmem:[%s2685_s3 + $0x24] ss:$8 sps:$4 sm:$0xff]  }
 0x11b   :  { %v374_v6 = vpop.f32.mrf.mxu0 }
 0x11c   :  { %v450_v6 = vld [vmem:[%s2686_s2 + $0xb8] sm:$0xff] }
 0x11d   :  { %v375_v7 = vpop.f32.mrf.mxu0 }
 0x11e   :  { %v462_v31 = vmul.f32 %v438_v25, %v375_v7  ;;  %v448_v7 = vld [vmem:[%s2686_s2 + $0xa8] sm:$0xff] }
 0x11f   :  { %v377_v8 = vpop.f32.mrf.mxu0  ;;  %v1954_v25 = vld [vmem:[%s2687_s4 + $0x8] sm:$0xff]  }
 0x120   :  { %v501_v39 = vpack.c.bf16 %v462_v31, %v461_v35  ;;  %v1932_v31 = vld [vmem:[%s2685_s3 + $0x30] ss:$8 sps:$4 sm:$0xff]  }
 0x121   :  { %v380_v9 = vpop.f32.mrf.mxu0  ;;  %v1938_v35 = vld [vmem:[%s2685_s3 + $0x50] ss:$8 sps:$4 sm:$0xff]  }
 0x122   :  { %v463_v28 = vmul.f32 %v439_v21, %v380_v9 }
 0x123   :  { %v382_v10 = vpop.f32.mrf.mxu0 }
 0x125   :  { %v383_v11 = vpop.f32.mrf.mxu0 }
 0x126   :  { %v464_v23 = vmul.f32 %v440_v17, %v383_v11 }
 0x127   :  { %v385_v12 = vpop.f32.mrf.mxu0 }
 0x128   :  { %v502_v32 = vpack.c.bf16 %v464_v23, %v463_v28  ;;  %v446_v12 = vld [vmem:[%s2686_s2 + $0x98] sm:$0xff]  ;;  %v1929_v28 = vld [vmem:[%s2685_s3 + $0x20] ss:$8 sps:$4 sm:$0xff]  }
 0x129   :  { %v388_v13 = vpop.f32.mrf.mxu0  ;;  %v1924_v23 = vld [vmem:[%s2685_s3 + $0x14] ss:$8 sps:$4 sm:$0xff]  }
 0x12a   :  { %v465_v19 = vmul.f32 %v441_v14, %v388_v13  ;;  %v444_v14 = vld [vmem:[%s2686_s2 + $0x88] sm:$0xff] }
 0x12b   :  { %v390_v15 = vpop.f32.mrf.mxu0 }
 0x12d   :  { %v391_v18 = vpop.f32.mrf.mxu0 }
 0x12e   :  { %v466_v20 = vmul.f32 %v442_v16, %v391_v18  ;;  %v443_v16 = vld [vmem:[%s2686_s2 + $0x80] sm:$0xff] }
 0x12f   :  { %v393_v22 = vpop.f32.mrf.mxu0 }
 0x130   :  { %v503_v24 = vpack.c.bf16 %v466_v20, %v465_v19  ;;  %v1953_v20 = vld [vmem:[%s2687_s4 + $0x10] ss:$0 sps:$4 sm:$0x33]   ;;  %v1921_v22 = vld [vmem:[%s2685_s3] ss:$8 sps:$4 sm:$0xff]  }
 0x131   :  { %v2223_v26 = vpop.f32.mrf.mxu0 }
 0x132   :  { %638 = vmatpush1.bf16.msra.mxu1 %v503_v24  ;;  %v467_v19 = vmul.f32 %v443_v16, %v2223_v26  ;;  %v824_v24 = vsel %vm822_vm1, %v1953_v20, 0  ;;  %v1926_v26 = vld [vmem:[%s2685_s3 + $0x10] ss:$8 sps:$4 sm:$0xff]  }
 0x133   :  { %v398_v30 = vpop.f32.mrf.mxu0  ;;  %639 = vmatprep.subr.bf16.mxu1 %v1990_v0 }
 0x134   :  { %v1930_v30 = vld [vmem:[%s2685_s3 + $0x34] ss:$8 sps:$4 sm:$0xff]  }
 0x135   :  { %v2233_v34 = vpop.f32.mrf.mxu0 }
 0x136   :  { %640 = vmatpush1.bf16.msra.mxu1 %v502_v32  ;;  %v468_v17 = vmul.f32 %v444_v14, %v2233_v34  ;;  %v1933_v32 = vld [vmem:[%s2685_s3 + $0x44] ss:$8 sps:$4 sm:$0xff]   ;;  %v1936_v34 = vld [vmem:[%s2685_s3 + $0x54] ss:$8 sps:$4 sm:$0xff]  }
 0x137   :  { %v401_v37 = vpop.f32.mrf.mxu0  ;;  %641 = vmatprep.subr.bf16.mxu1 %v1990_v0 }
 0x138   :  { %v504_v21 = vpack.c.bf16 %v468_v17, %v467_v19  ;;  %v1941_v37 = vld [vmem:[%s2685_s3 + $0x60] ss:$8 sps:$4 sm:$0xff]  }
 0x139   :  { %v404_v41 = vpop.f32.mrf.mxu0 }
 0x13a   :  { %642 = vmatpush1.bf16.msra.mxu1 %v501_v39  ;;  %v469_v15 = vmul.f32 %v445_v43, %v404_v41  ;;  %v1944_v39 = vld [vmem:[%s2685_s3 + $0x70] ss:$8 sps:$4 sm:$0xff]   ;;  %v1947_v41 = vld [vmem:[%s2685_s3 + $0x80] ss:$8 sps:$4 sm:$0xff]  }
 0x13b   :  { %v406_v47 = vpop.f32.mrf.mxu0  ;;  %643 = vmatprep.subr.bf16.mxu1 %v1990_v0 }
 0x13c   :  { %v1955_v47 = vld [vmem:[%s2687_s4] sm:$0xff]  }
 0x13d   :  { %v407_v51 = vpop.f32.mrf.mxu0 }
 0x13e   :  { %644 = vmatpush1.bf16.msra.mxu1 %v500_v49  ;;  %v470_v44 = vmul.f32 %v446_v12, %v407_v51  ;;  %v1635_v49 = vcombine.high %v495_v45, %v495_v45  ;;  %v1956_v51 = vld [vmem:[%s2688_s7 + $0x28] ss:$0 sps:$4 sm:$0x33]  }
 0x13f   :  { %v409_v59 = vpop.f32.mrf.mxu0  ;;  %645 = vmatprep.subr.bf16.mxu1 %v1990_v0  ;;  %v1246_v54 = vsel %vm822_vm1, %v1956_v51, 0  ;;  %v946_v51 = vld [vmem:[%s2689_s5] sm:$0xff] }
 0x140   :  { %v505_v18 = vpack.c.bf16 %v470_v44, %v469_v15  ;;  %1793 = vmatpush3.bf16.msra.mxu0 %v1246_v54  ;;  %v1958_v59 = vld [vmem:[%s2688_s7 + $0x18] sm:$0xff]  }
 0x141   :  { %v412_v1 = vpop.f32.mrf.mxu0  ;;  %1794 = vmatprep.subr.bf16.mxu0 %v1991_v29 }
 0x142   :  { %646 = vmatpush1.bf16.msra.mxu1 %v499_v63  ;;  %v471_v13 = vmul.f32 %v447_v52, %v412_v1 }
 0x143   :  { %v414_v2 = vpop.f32.mrf.mxu0  ;;  %647 = vmatprep.subr.bf16.mxu1 %v1990_v0 }
 0x144   :  { %1795 = vmatpush3.bf16.msra.mxu0 %v1957_v57  ;;  %v988_v57 = vld [vmem:[%s2690_s6] sm:$0xff] }
 0x145   :  { %v415_v60 = vpop.f32.mrf.mxu0  ;;  %1796 = vmatprep.subr.bf16.mxu0 %v1991_v29 }
 0x146   :  { %648 = vmatpush1.bf16.msra.mxu1 %v498_v3 }
 0x147   :  { %v417_v4 = vpop.f32.mrf.mxu0  ;;  %649 = vmatprep.subr.bf16.mxu1 %v1990_v0 }
 0x148   :  { %1797 = vmatpush3.bf16.msra.mxu0 %v1958_v59 }
 0x149   :  { %v420_v5 = vpop.f32.mrf.mxu0  ;;  %1798 = vmatprep.subr.bf16.mxu0 %v1991_v29 }
 0x14a   :  { %650 = vmatpush1.bf16.msra.mxu1 %v497_v55  ;;  %v473_v9 = vmul.f32 %v449_v58, %v420_v5  ;;  %v472_v55 = vmul.f32 %v448_v7, %v415_v60 }
 0x14b   :  { %v422_v56 = vpop.f32.mrf.mxu0  ;;  %651 = vmatprep.subr.bf16.mxu1 %v1990_v0 }
 0x14d   :  { %v423_v8 = vpop.f32.mrf.mxu0 }
 0x14e   :  { %v474_v10 = vmul.f32 %v450_v6, %v423_v8  ;;  %652 = vmatpush1.bf16.msra.mxu1 %v496_v46  ;;  %v506_v46 = vpack.c.bf16 %v472_v55, %v471_v13 }
 0x14f   :  { %v425_v53 = vpop.f32.mrf.mxu0  ;;  %661 = vmatprep.subr.bf16.mxu1 %v1990_v0 }
 0x150   :  { %v507_v11 = vpack.c.bf16 %v474_v10, %v473_v9 }
 0x152   :  { %662 = vmatpush2.bf16.msra.mxu1 %v507_v11 }
 0x153   :  { %663 = vmatprep.subr.bf16.mxu1 %v1990_v0 }
 0x156   :  { %664 = vmatpush2.bf16.msra.mxu1 %v506_v46 }
 0x157   :  { %665 = vmatprep.subr.bf16.mxu1 %v1990_v0 }
 0x15a   :  { %666 = vmatpush2.bf16.msra.mxu1 %v505_v18 }
 0x15b   :  { %667 = vmatprep.subr.bf16.mxu1 %v1990_v0 }
 0x15e   :  { %668 = vmatpush2.bf16.msra.mxu1 %v504_v21 }
 0x15f   :  { %1742 = vmatprep.subr.bf16.mxu1 %v1991_v29 }
 0x161   :  { %670 = vmatmul.mubr.bf16.vlgmr.msra.gmra.mxu1 %v1921_v22 }
 0x162   :  { %1637 = vmatprep.mubr.msk.bf16.mxu1 %vm261_vm0, %v1924_v23  ;;  %1743 = vmatpush3.bf16.msra.mxu1 %v824_v24 }
 0x163   :  { %1744 = vmatprep.subr.bf16.mxu1 %v1991_v29 }
 0x166   :  { %1745 = vmatpush3.bf16.msra.mxu1 %v1954_v25 }
 0x167   :  { %1746 = vmatprep.subr.bf16.mxu1 %v1991_v29 }
 0x169   :  { %678 = vmatmul.mubr.bf16.gmra.mxu1 %v1926_v26 }
 0x16a   :  { %1638 = vmatprep.mubr.msk.bf16.mxu1 %vm261_vm0, %v1927_v27  ;;  %1747 = vmatpush3.bf16.msra.mxu1 %v1955_v47 }
 0x16b   :  { %1848 = vmatprep.subr.bf16.mxu1 %v1990_v0 }
 0x171   :  { %686 = vmatmul.mubr.bf16.gmra.mxu1 %v1929_v28 }
 0x172   :  { %1639 = vmatprep.mubr.msk.bf16.mxu1 %vm261_vm0, %v1930_v30 }
 0x179   :  { %694 = vmatmul.mubr.bf16.gmra.mxu1 %v1932_v31 }
 0x17a   :  { %1640 = vmatprep.mubr.msk.bf16.mxu1 %vm261_vm0, %v1933_v32 }
 0x181   :  { %702 = vmatmul.mubr.bf16.gmra.mxu1 %v1935_v33 }
 0x182   :  { %1641 = vmatprep.mubr.msk.bf16.mxu1 %vm261_vm0, %v1936_v34 }
 0x189   :  { %710 = vmatmul.mubr.bf16.gmra.mxu1 %v1938_v35 }
 0x18a   :  { %1642 = vmatprep.mubr.msk.bf16.mxu1 %vm261_vm0, %v1939_v36 }
 0x191   :  { %718 = vmatmul.mubr.bf16.gmra.mxu1 %v1941_v37 }
 0x192   :  { %1643 = vmatprep.mubr.msk.bf16.mxu1 %vm261_vm0, %v1942_v38  ;;  %v1959_v38 = vld [vmem:[%s2688_s7 + $0x10] sm:$0xff]  }
 0x193   :  { %1799 = vmatpush3.bf16.msra.mxu0 %v1959_v38 }
 0x194   :  { %1800 = vmatprep.subr.bf16.mxu0 %v1991_v29 }
 0x199   :  { %726 = vmatmul.mubr.bf16.gmra.mxu1 %v1944_v39 }
 0x19a   :  { %1644 = vmatprep.mubr.msk.bf16.mxu1 %vm261_vm0, %v1945_v40 }
 0x1a1   :  { %734 = vmatmul.mubr.bf16.gmra.mxu1 %v1947_v41 }
 0x1a2   :  { %1645 = vmatprep.mubr.msk.bf16.mxu1 %vm261_vm0, %v1948_v42  ;;  %v1960_v42 = vld [vmem:[%s2688_s7 + $0x8] sm:$0xff]  }
 0x1a3   :  { %1801 = vmatpush3.bf16.msra.mxu0 %v1960_v42 }
 0x1a4   :  { %1802 = vmatprep.subr.bf16.mxu0 %v1991_v29 }
 0x1a9   :  { %742 = vmatmul.mubr.bf16.gmra.mxu1 %v1950_v48 }
 0x1aa   :  { %1646 = vmatprep.mubr.msk.bf16.mxu1 %vm261_vm0, %v1635_v49  ;;  %v1961_v49 = vld [vmem:[%s2688_s7] sm:$0xff]  }
 0x1ab   :  { %1803 = vmatpush3.bf16.msra.mxu0 %v1961_v49 }
 0x1ac   :  { %1440 = vmatprep.subr.bf16.mxu0 %v1990_v0 }
 0x1b1   :  { %750 = vmatmul.mubr.bf16.gmra.mxu1 %v1634_v50 }
 0x1b2   :  { %1748 = vmatprep.mubr.msk.bf16.mxu1 %vm1992_vm2, %v1991_v29 }
 0x221   :  { %v671_v61 = vpop.f32.mrf.mxu1 }
 0x223   :  { %v673_v63 = vpop.f32.mrf.mxu1 }
 0x224   :  { %v947_v63 = vld [vmem:[%s2689_s5 + $0x8] sm:$0xff] }
 0x225   :  { %v674_v1 = vpop.f32.mrf.mxu1 }
 0x226   :  { %v757_v62 = vpack.c.bf16 %v674_v1, %v671_v61 }
 0x227   :  { %v676_v2 = vpop.f32.mrf.mxu1 }
 0x228   :  { %1749 = vmatmul.mubr.msk.bf16.vlgmr.msra.gmra.mxu1 %vm788_vm3, %v757_v62  ;;  %v989_v2 = vld [vmem:[%s2690_s6 + $0x8] sm:$0xff] }
 0x229   :  { %v679_v3 = vpop.f32.mrf.mxu1  ;;  %1752 = vmatprep.mubr.msk.bf16.mxu1 %vm1992_vm2, %v1991_v29 }
 0x22b   :  { %v681_v60 = vpop.f32.mrf.mxu1 }
 0x22d   :  { %v682_v4 = vpop.f32.mrf.mxu1 }
 0x22e   :  { %v758_v5 = vpack.c.bf16 %v682_v4, %v679_v3 }
 0x22f   :  { %v684_v58 = vpop.f32.mrf.mxu1 }
 0x230   :  { %1753 = vmatmul.mubr.msk.bf16.gmra.mxu1 %vm788_vm3, %v758_v5  ;;  %v948_v5 = vld [vmem:[%s2689_s5 + $0x10] sm:$0xff] }
 0x231   :  { %v687_v56 = vpop.f32.mrf.mxu1  ;;  %1756 = vmatprep.mubr.msk.bf16.mxu1 %vm1992_vm2, %v1991_v29 }
 0x233   :  { %v689_v6 = vpop.f32.mrf.mxu1 }
 0x235   :  { %v690_v7 = vpop.f32.mrf.mxu1 }
 0x236   :  { %v759_v8 = vpack.c.bf16 %v690_v7, %v687_v56  ;;  %v990_v7 = vld [vmem:[%s2690_s6 + $0x10] sm:$0xff] }
 0x237   :  { %v692_v9 = vpop.f32.mrf.mxu1 }
 0x238   :  { %1757 = vmatmul.mubr.msk.bf16.gmra.mxu1 %vm788_vm3, %v759_v8 }
 0x239   :  { %v695_v10 = vpop.f32.mrf.mxu1  ;;  %1760 = vmatprep.mubr.msk.bf16.mxu1 %vm1992_vm2, %v1991_v29 }
 0x23b   :  { %v697_v52 = vpop.f32.mrf.mxu1 }
 0x23d   :  { %v698_v53 = vpop.f32.mrf.mxu1 }
 0x23e   :  { %v760_v55 = vpack.c.bf16 %v698_v53, %v695_v10  ;;  %v949_v53 = vld [vmem:[%s2689_s5 + $0x18] sm:$0xff] }
 0x23f   :  { %v700_v11 = vpop.f32.mrf.mxu1 }
 0x240   :  { %1761 = vmatmul.mubr.msk.bf16.gmra.mxu1 %vm788_vm3, %v760_v55 }
 0x241   :  { %v703_v12 = vpop.f32.mrf.mxu1  ;;  %1764 = vmatprep.mubr.msk.bf16.mxu1 %vm1992_vm2, %v1991_v29 }
 0x243   :  { %v705_v13 = vpop.f32.mrf.mxu1 }
 0x245   :  { %v706_v43 = vpop.f32.mrf.mxu1 }
 0x246   :  { %v761_v44 = vpack.c.bf16 %v706_v43, %v703_v12  ;;  %v991_v43 = vld [vmem:[%s2690_s6 + $0x18] sm:$0xff] }
 0x247   :  { %v708_v46 = vpop.f32.mrf.mxu1 }
 0x248   :  { %1765 = vmatmul.mubr.msk.bf16.gmra.mxu1 %vm788_vm3, %v761_v44 }
 0x249   :  { %v711_v14 = vpop.f32.mrf.mxu1  ;;  %1768 = vmatprep.mubr.msk.bf16.mxu1 %vm1992_vm2, %v1991_v29 }
 0x24b   :  { %v713_v15 = vpop.f32.mrf.mxu1 }
 0x24d   :  { %v714_v16 = vpop.f32.mrf.mxu1 }
 0x24e   :  { %v762_v17 = vpack.c.bf16 %v714_v16, %v711_v14 }
 0x24f   :  { %v716_v18 = vpop.f32.mrf.mxu1 }
 0x250   :  { %1769 = vmatmul.mubr.msk.bf16.gmra.mxu1 %vm788_vm3, %v762_v17  ;;  %v950_v17 = vld [vmem:[%s2689_s5 + $0x20] sm:$0xff] }
 0x251   :  { %v719_v19 = vpop.f32.mrf.mxu1  ;;  %1772 = vmatprep.mubr.msk.bf16.mxu1 %vm1992_vm2, %v1991_v29 }
 0x253   :  { %v721_v20 = vpop.f32.mrf.mxu1 }
 0x255   :  { %v722_v21 = vpop.f32.mrf.mxu1 }
 0x256   :  { %v763_v22 = vpack.c.bf16 %v722_v21, %v719_v19 }
 0x257   :  { %v724_v23 = vpop.f32.mrf.mxu1 }
 0x258   :  { %1773 = vmatmul.mubr.msk.bf16.gmra.mxu1 %vm788_vm3, %v763_v22  ;;  %v992_v22 = vld [vmem:[%s2690_s6 + $0x20] sm:$0xff] }
 0x259   :  { %v727_v24 = vpop.f32.mrf.mxu1  ;;  %1776 = vmatprep.mubr.msk.bf16.mxu1 %vm1992_vm2, %v1991_v29 }
 0x25b   :  { %v729_v25 = vpop.f32.mrf.mxu1 }
 0x25d   :  { %v730_v26 = vpop.f32.mrf.mxu1 }
 0x25e   :  { %v764_v27 = vpack.c.bf16 %v730_v26, %v727_v24 }
 0x25f   :  { %v732_v28 = vpop.f32.mrf.mxu1 }
 0x260   :  { %1777 = vmatmul.mubr.msk.bf16.gmra.mxu1 %vm788_vm3, %v764_v27  ;;  %v951_v27 = vld [vmem:[%s2689_s5 + $0x28] sm:$0xff] }
 0x261   :  { %v735_v30 = vpop.f32.mrf.mxu1  ;;  %1780 = vmatprep.mubr.msk.bf16.mxu1 %vm1992_vm2, %v1991_v29 }
 0x263   :  { %v737_v31 = vpop.f32.mrf.mxu1 }
 0x265   :  { %v738_v32 = vpop.f32.mrf.mxu1 }
 0x266   :  { %v765_v33 = vpack.c.bf16 %v738_v32, %v735_v30 }
 0x267   :  { %v740_v34 = vpop.f32.mrf.mxu1 }
 0x268   :  { %1781 = vmatmul.mubr.msk.bf16.gmra.mxu1 %vm788_vm3, %v765_v33  ;;  %v993_v33 = vld [vmem:[%s2690_s6 + $0x28] sm:$0xff] }
 0x269   :  { %v743_v35 = vpop.f32.mrf.mxu1  ;;  %1784 = vmatprep.mubr.msk.bf16.mxu1 %vm1992_vm2, %v1991_v29 }
 0x26b   :  { %v745_v36 = vpop.f32.mrf.mxu1 }
 0x26d   :  { %v746_v37 = vpop.f32.mrf.mxu1 }
 0x26e   :  { %v766_v39 = vpack.c.bf16 %v746_v37, %v743_v35 }
 0x26f   :  { %v748_v40 = vpop.f32.mrf.mxu1 }
 0x270   :  { %1785 = vmatmul.mubr.msk.bf16.gmra.mxu1 %vm788_vm3, %v766_v39  ;;  %v952_v39 = vld [vmem:[%s2689_s5 + $0x30] sm:$0xff] }
 0x271   :  { %v751_v41 = vpop.f32.mrf.mxu1  ;;  %1788 = vmatprep.mubr.msk.bf16.mxu1 %vm1992_vm2, %v1991_v29 }
 0x272   :  { %v767_v47 = vpack.c.bf16 %v751_v41, %v751_v41 }
 0x273   :  { %v753_v45 = vpop.f32.mrf.mxu1 }
 0x274   :  { %v994_v45 = vld [vmem:[%s2690_s6 + $0x30] sm:$0xff] }
 0x275   :  { %v754_v48 = vpop.f32.mrf.mxu1 }
 0x277   :  { %v755_v50 = vpop.f32.mrf.mxu1 }
 0x278   :  { %1789 = vmatmul.mubr.msk.bf16.gmra.mxu1 %vm788_vm3, %v767_v47 }
 0x2e8   :  { %v860_v54 = vpop.f32.mrf.mxu1 }
 0x2e9   :  { %v967_v59 = vmul.f32 %v946_v51, %v860_v54  ;;  %v953_v54 = vld [vmem:[%s2689_s5 + $0x38] sm:$0xff] }
 0x2ea   :  { %v1750_v61 = vpop.f32.mrf.mxu1 }
 0x2eb   :  { %v1009_v1 = vadd.f32 %v988_v57, %v967_v59 }
 0x2ec   :  { %v863_v62 = vpop.f32.mrf.mxu1 }
 0x2ed   :  { %vm1030_vm4 = vcmp.ge.f32.partialorder %v1009_v1, 0.0  ;;  %v1051_v3 = vmul.f32 0.2, %v1009_v1  ;;  %v968_v60 = vmul.f32 %v947_v63, %v863_v62 }
 0x2ee   :  { %v1751_v4 = vpop.f32.mrf.mxu1 }
 0x2ef   :  { %v1072_v58 = vsel %vm1030_vm4, %v1009_v1, %v1051_v3  ;;  %v1010_v56 = vadd.f32 %v989_v2, %v968_v60  ;;  %v995_v1 = vld [vmem:[%s2690_s6 + $0x38] sm:$0xff] }
 0x2f0   :  { %v868_v6 = vpop.f32.mrf.mxu1  ;;  %v1093_v10 = vmul.f32 0.70710677, %v1072_v58 }
 0x2f1   :  { %vm1031_vm5 = vcmp.ge.f32.partialorder %v1010_v56, 0.0  ;;  %v1052_v8 = vmul.f32 0.2, %v1010_v56  ;;  %v969_v9 = vmul.f32 %v948_v5, %v868_v6  ;;  %v954_v5 = vld [vmem:[%s2689_s5 + $0x40] sm:$0xff] }
 0x2f2   :  { %v1754_v52 = vpop.f32.mrf.mxu1  ;;  %v1661_v14 = vclamps-f32 %v1093_v10, 256.0 }
 0x2f3   :  { %v1073_v55 = vsel %vm1031_vm5, %v1010_v56, %v1052_v8  ;;  %v1011_v11 = vadd.f32 %v990_v7, %v969_v9  ;;  %v996_v7 = vld [vmem:[%s2690_s6 + $0x40] sm:$0xff] }
 0x2f4   :  { %v1094_v12 = vmul.f32 0.70710677, %v1073_v55  ;;  %v871_v13 = vpop.f32.mrf.mxu1  ;;  %v955_v55 = vld [vmem:[%s2689_s5 + $0x48] sm:$0xff] }
 0x2f5   :  { %vm1032_vm6 = vcmp.ge.f32.partialorder %v1011_v11, 0.0  ;;  %v1053_v44 = vmul.f32 0.2, %v1011_v11  ;;  %v970_v46 = vmul.f32 %v949_v53, %v871_v13 }
 0x2f6   :  { %v1662_v15 = vclamps-f32 %v1094_v12, 256.0  ;;  %v1755_v16 = vpop.f32.mrf.mxu1 }
 0x2f7   :  { %v1074_v18 = vsel %vm1032_vm6, %v1011_v11, %v1053_v44  ;;  %v1012_v19 = vadd.f32 %v991_v43, %v970_v46  ;;  %v997_v44 = vld [vmem:[%s2690_s6 + $0x48] sm:$0xff] }
 0x2f8   :  { %v1156_v20 = vpack.c.bf16 %v1662_v15, %v1661_v14  ;;  %v876_v21 = vpop.f32.mrf.mxu1  ;;  %v1095_v25 = vmul.f32 0.70710677, %v1074_v18  ;;  %v956_v18 = vld [vmem:[%s2689_s5 + $0x50] sm:$0xff] }
 0x2f9   :  { %vm1033_vm8 = vcmp.ge.f32.partialorder %v1012_v19, 0.0  ;;  %v1054_v23 = vmul.f32 0.2, %v1012_v19  ;;  %v971_v24 = vmul.f32 %v950_v17, %v876_v21 }
 0x2fa   :  { %v1758_v26 = vpop.f32.mrf.mxu1  ;;  %1805 = vmatmul.mubr.msk.bf16.vlgmr.msra.gmra.mxu0 %vm1211_vm7, %v1156_v20  ;;  %v1663_v36 = vclamps-f32 %v1095_v25, 256.0 }
 0x2fb   :  { %v1075_v28 = vsel %vm1033_vm8, %v1012_v19, %v1054_v23  ;;  %v1013_v30 = vadd.f32 %v992_v22, %v971_v24  ;;  %1808 = vmatprep.mubr.msk.bf16.mxu0 %vm1992_vm2, %v1991_v29  ;;  %v998_v22 = vld [vmem:[%s2690_s6 + $0x50] sm:$0xff] }
 0x2fc   :  { %v1096_v31 = vmul.f32 0.70710677, %v1075_v28  ;;  %v879_v32 = vpop.f32.mrf.mxu1  ;;  %v957_v28 = vld [vmem:[%s2689_s5 + $0x58] sm:$0xff] }
 0x2fd   :  { %vm1034_vm9 = vcmp.ge.f32.partialorder %v1013_v30, 0.0  ;;  %v1055_v34 = vmul.f32 0.2, %v1013_v30  ;;  %v972_v35 = vmul.f32 %v951_v27, %v879_v32 }
 0x2fe   :  { %v1664_v37 = vclamps-f32 %v1096_v31, 256.0  ;;  %v1759_v38 = vpop.f32.mrf.mxu1 }
 0x2ff   :  { %v1076_v40 = vsel %vm1034_vm9, %v1013_v30, %v1055_v34  ;;  %v1014_v41 = vadd.f32 %v993_v33, %v972_v35  ;;  %v999_v34 = vld [vmem:[%s2690_s6 + $0x58] sm:$0xff] }
 0x300   :  { %v884_v42 = vpop.f32.mrf.mxu1  ;;  %v1157_v47 = vpack.c.bf16 %v1664_v37, %v1663_v36  ;;  %v1097_v50 = vmul.f32 0.70710677, %v1076_v40  ;;  %v958_v40 = vld [vmem:[%s2689_s5 + $0x60] sm:$0xff] }
 0x301   :  { %vm1035_vm10 = vcmp.ge.f32.partialorder %v1014_v41, 0.0  ;;  %v1056_v48 = vmul.f32 0.2, %v1014_v41  ;;  %v973_v49 = vmul.f32 %v952_v39, %v884_v42 }
 0x302   :  { %v1762_v51 = vpop.f32.mrf.mxu1  ;;  %1809 = vmatmul.mubr.msk.bf16.gmra.mxu0 %vm1211_vm7, %v1157_v47  ;;  %v1665_v3 = vclamps-f32 %v1097_v50, 256.0  ;;  %v1000_v47 = vld [vmem:[%s2690_s6 + $0x60] sm:$0xff] }
 0x303   :  { %v1077_v57 = vsel %vm1035_vm10, %v1014_v41, %v1056_v48  ;;  %v1015_v59 = vadd.f32 %v994_v45, %v973_v49  ;;  %1812 = vmatprep.mubr.msk.bf16.mxu0 %vm1992_vm2, %v1991_v29 }
 0x304   :  { %v1098_v61 = vmul.f32 0.70710677, %v1077_v57  ;;  %v887_v63 = vpop.f32.mrf.mxu1  ;;  %v959_v57 = vld [vmem:[%s2689_s5 + $0x68] sm:$0xff] }
 0x305   :  { %vm1036_vm11 = vcmp.ge.f32.partialorder %v1015_v59, 0.0  ;;  %v1057_v62 = vmul.f32 0.2, %v1015_v59  ;;  %v974_v2 = vmul.f32 %v953_v54, %v887_v63 }
 0x306   :  { %v1666_v60 = vclamps-f32 %v1098_v61, 256.0  ;;  %v1763_v4 = vpop.f32.mrf.mxu1 }
 0x307   :  { %v1078_v58 = vsel %vm1036_vm11, %v1015_v59, %v1057_v62  ;;  %v1016_v56 = vadd.f32 %v995_v1, %v974_v2  ;;  %v1001_v62 = vld [vmem:[%s2690_s6 + $0x68] sm:$0xff] }
 0x308   :  { %v892_v6 = vpop.f32.mrf.mxu1  ;;  %v1158_v8 = vpack.c.bf16 %v1666_v60, %v1665_v3  ;;  %v1099_v52 = vmul.f32 0.70710677, %v1078_v58  ;;  %v960_v58 = vld [vmem:[%s2689_s5 + $0x70] sm:$0xff] }
 0x309   :  { %vm1037_vm12 = vcmp.ge.f32.partialorder %v1016_v56, 0.0  ;;  %v1058_v9 = vmul.f32 0.2, %v1016_v56  ;;  %v975_v10 = vmul.f32 %v954_v5, %v892_v6 }
 0x30a   :  { %v1766_v53 = vpop.f32.mrf.mxu1  ;;  %1813 = vmatmul.mubr.msk.bf16.gmra.mxu0 %vm1211_vm7, %v1158_v8  ;;  %v1667_v15 = vclamps-f32 %v1099_v52, 256.0  ;;  %v1002_v8 = vld [vmem:[%s2690_s6 + $0x70] sm:$0xff] }
 0x30b   :  { %v1079_v11 = vsel %vm1037_vm12, %v1016_v56, %v1058_v9  ;;  %v1017_v12 = vadd.f32 %v996_v7, %v975_v10  ;;  %1816 = vmatprep.mubr.msk.bf16.mxu0 %vm1992_vm2, %v1991_v29  ;;  %vm1423_vm12 = vcmask 326656  }
 0x30c   :  { %v1100_v13 = vmul.f32 0.70710677, %v1079_v11  ;;  %v895_v43 = vpop.f32.mrf.mxu1  ;;  %v961_v11 = vld [vmem:[%s2689_s5 + $0x78] sm:$0xff] }
 0x30d   :  { %vm1038_vm13 = vcmp.ge.f32.partialorder %v1017_v12, 0.0  ;;  %v1059_v46 = vmul.f32 0.2, %v1017_v12  ;;  %v976_v14 = vmul.f32 %v955_v55, %v895_v43 }
 0x30e   :  { %v1668_v16 = vclamps-f32 %v1100_v13, 256.0  ;;  %v1767_v17 = vpop.f32.mrf.mxu1 }
 0x30f   :  { %v1080_v19 = vsel %vm1038_vm13, %v1017_v12, %v1059_v46  ;;  %v1018_v20 = vadd.f32 %v997_v44, %v976_v14  ;;  %v1003_v46 = vld [vmem:[%s2690_s6 + $0x78] sm:$0xff] }
 0x310   :  { %v900_v21 = vpop.f32.mrf.mxu1  ;;  %v1159_v23 = vpack.c.bf16 %v1668_v16, %v1667_v15  ;;  %v1101_v26 = vmul.f32 0.70710677, %v1080_v19  ;;  %v962_v19 = vld [vmem:[%s2689_s5 + $0x80] sm:$0xff] }
 0x311   :  { %vm1039_vm14 = vcmp.ge.f32.partialorder %v1018_v20, 0.0  ;;  %v1060_v24 = vmul.f32 0.2, %v1018_v20  ;;  %v977_v25 = vmul.f32 %v956_v18, %v900_v21 }
 0x312   :  { %v1770_v27 = vpop.f32.mrf.mxu1  ;;  %1817 = vmatmul.mubr.msk.bf16.gmra.mxu0 %vm1211_vm7, %v1159_v23  ;;  %v1669_v37 = vclamps-f32 %v1101_v26, 256.0 }
 0x313   :  { %v1081_v30 = vsel %vm1039_vm14, %v1018_v20, %v1060_v24  ;;  %v1019_v31 = vadd.f32 %v998_v22, %v977_v25  ;;  %1820 = vmatprep.mubr.msk.bf16.mxu0 %vm1992_vm2, %v1991_v29  ;;  %v1004_v24 = vld [vmem:[%s2690_s6 + $0x80] sm:$0xff] }
 0x314   :  { %v1102_v32 = vmul.f32 0.70710677, %v1081_v30  ;;  %v903_v33 = vpop.f32.mrf.mxu1  ;;  %v963_v30 = vld [vmem:[%s2689_s5 + $0x88] sm:$0xff] }
 0x315   :  { %vm1040_vm15 = vcmp.ge.f32.partialorder %v1019_v31, 0.0  ;;  %v1061_v35 = vmul.f32 0.2, %v1019_v31  ;;  %v978_v36 = vmul.f32 %v957_v28, %v903_v33 }
 0x316   :  { %v1670_v38 = vclamps-f32 %v1102_v32, 256.0  ;;  %v1771_v39 = vpop.f32.mrf.mxu1 }
 0x317   :  { %v1082_v41 = vsel %vm1040_vm15, %v1019_v31, %v1061_v35  ;;  %v1020_v42 = vadd.f32 %v999_v34, %v978_v36  ;;  %v1005_v35 = vld [vmem:[%s2690_s6 + $0x88] sm:$0xff] }
 0x318   :  { %v908_v45 = vpop.f32.mrf.mxu1  ;;  %v1160_v48 = vpack.c.bf16 %v1670_v38, %v1669_v37  ;;  %v1103_v51 = vmul.f32 0.70710677, %v1082_v41  ;;  %v964_v41 = vld [vmem:[%s2689_s5 + $0x90] sm:$0xff] }
 0x319   :  { %vm1041_vm0 = vcmp.ge.f32.partialorder %v1020_v42, 0.0  ;;  %v1062_v49 = vmul.f32 0.2, %v1020_v42  ;;  %v979_v50 = vmul.f32 %v958_v40, %v908_v45 }
 0x31a   :  { %v1774_v54 = vpop.f32.mrf.mxu1  ;;  %1821 = vmatmul.mubr.msk.bf16.gmra.mxu0 %vm1211_vm7, %v1160_v48  ;;  %v1671_v60 = vclamps-f32 %v1103_v51, 256.0 }
 0x31b   :  { %v1083_v59 = vsel %vm1041_vm0, %v1020_v42, %v1062_v49  ;;  %v1021_v61 = vadd.f32 %v1000_v47, %v979_v50  ;;  %1824 = vmatprep.mubr.msk.bf16.mxu0 %vm1992_vm2, %v1991_v29  ;;  %v1006_v50 = vld [vmem:[%s2690_s6 + $0x90] sm:$0xff] }
 0x31c   :  { %v1104_v63 = vmul.f32 0.70710677, %v1083_v59  ;;  %v911_v1 = vpop.f32.mrf.mxu1  ;;  %v965_v59 = vld [vmem:[%s2689_s5 + $0x98] sm:$0xff] }
 0x31d   :  { %vm1042_vm1 = vcmp.ge.f32.partialorder %v1021_v61, 0.0  ;;  %v1063_v2 = vmul.f32 0.2, %v1021_v61  ;;  %v980_v3 = vmul.f32 %v959_v57, %v911_v1 }
 0x31e   :  { %v1672_v4 = vclamps-f32 %v1104_v63, 256.0  ;;  %v1775_v5 = vpop.f32.mrf.mxu1 }
 0x31f   :  { %v1084_v56 = vsel %vm1042_vm1, %v1021_v61, %v1063_v2  ;;  %v1022_v6 = vadd.f32 %v1001_v62, %v980_v3  ;;  %v1007_v3 = vld [vmem:[%s2690_s6 + $0x98] sm:$0xff] }
 0x320   :  { %v916_v7 = vpop.f32.mrf.mxu1  ;;  %v1161_v9 = vpack.c.bf16 %v1672_v4, %v1671_v60  ;;  %v1105_v53 = vmul.f32 0.70710677, %v1084_v56  ;;  %v966_v56 = vld [vmem:[%s2689_s5 + $0xa0] sm:$0xff] }
 0x321   :  { %vm1043_vm3 = vcmp.ge.f32.partialorder %v1022_v6, 0.0  ;;  %v1064_v10 = vmul.f32 0.2, %v1022_v6  ;;  %v981_v52 = vmul.f32 %v960_v58, %v916_v7 }
 0x322   :  { %v1778_v55 = vpop.f32.mrf.mxu1  ;;  %1825 = vmatmul.mubr.msk.bf16.gmra.mxu0 %vm1211_vm7, %v1161_v9  ;;  %v1673_v16 = vclamps-f32 %v1105_v53, 256.0 }
 0x323   :  { %v1085_v12 = vsel %vm1043_vm3, %v1022_v6, %v1064_v10  ;;  %v1023_v13 = vadd.f32 %v1002_v8, %v981_v52  ;;  %1828 = vmatprep.mubr.msk.bf16.mxu0 %vm1992_vm2, %v1991_v29  ;;  %v1008_v52 = vld [vmem:[%s2690_s6 + $0xa0] sm:$0xff] }
 0x324   :  { %v1106_v43 = vmul.f32 0.70710677, %v1085_v12  ;;  %v919_v44 = vpop.f32.mrf.mxu1 }
 0x325   :  { %vm1044_vm4 = vcmp.ge.f32.partialorder %v1023_v13, 0.0  ;;  %v1065_v14 = vmul.f32 0.2, %v1023_v13  ;;  %v982_v15 = vmul.f32 %v961_v11, %v919_v44 }
 0x326   :  { %v1674_v17 = vclamps-f32 %v1106_v43, 256.0  ;;  %v1779_v18 = vpop.f32.mrf.mxu1 }
 0x327   :  { %v1086_v20 = vsel %vm1044_vm4, %v1023_v13, %v1065_v14  ;;  %v1024_v21 = vadd.f32 %v1003_v46, %v982_v15 }
 0x328   :  { %v1162_v22 = vpack.c.bf16 %v1674_v17, %v1673_v16  ;;  %v924_v23 = vpop.f32.mrf.mxu1  ;;  %v1107_v27 = vmul.f32 0.70710677, %v1086_v20 }
 0x329   :  { %vm1045_vm5 = vcmp.ge.f32.partialorder %v1024_v21, 0.0  ;;  %v1066_v25 = vmul.f32 0.2, %v1024_v21  ;;  %v983_v26 = vmul.f32 %v962_v19, %v924_v23  ;;  %v1970_v23 = vld [vmem:[%s2691_s8 + $0x4] ss:$8 sps:$4 sm:$0xff]  }
 0x32a   :  { %1829 = vmatmul.mubr.msk.bf16.gmra.mxu0 %vm1211_vm7, %v1162_v22  ;;  %v1782_v28 = vpop.f32.mrf.mxu1  ;;  %v1675_v38 = vclamps-f32 %v1107_v27, 256.0  ;;  %v1964_v22 = vld [vmem:[%s2691_s8 + $0x14] ss:$8 sps:$4 sm:$0xff]  }
 0x32b   :  { %v1087_v31 = vsel %vm1045_vm5, %v1024_v21, %v1066_v25  ;;  %1832 = vmatprep.mubr.msk.bf16.mxu0 %vm1992_vm2, %v1991_v29  ;;  %v1025_v32 = vadd.f32 %v1004_v24, %v983_v26  ;;  %1708 = vmatprep.mubr.msk.bf16.mxu1 %vm1423_vm12, %v1964_v22 }
 0x32c   :  { %v1108_v33 = vmul.f32 0.70710677, %v1087_v31  ;;  %v927_v34 = vpop.f32.mrf.mxu1 }
 0x32d   :  { %vm1046_vm6 = vcmp.ge.f32.partialorder %v1025_v32, 0.0  ;;  %v1067_v36 = vmul.f32 0.2, %v1025_v32  ;;  %v984_v37 = vmul.f32 %v963_v30, %v927_v34 }
 0x32e   :  { %v1676_v39 = vclamps-f32 %v1108_v33, 256.0  ;;  %v1783_v40 = vpop.f32.mrf.mxu1 }
 0x32f   :  { %v1088_v42 = vsel %vm1046_vm6, %v1025_v32, %v1067_v36  ;;  %v1026_v45 = vadd.f32 %v1005_v35, %v984_v37 }
 0x330   :  { %v1163_v47 = vpack.c.bf16 %v1676_v39, %v1675_v38  ;;  %v1109_v48 = vmul.f32 0.70710677, %v1088_v42  ;;  %v932_v49 = vpop.f32.mrf.mxu1 }
 0x331   :  { %vm1047_vm8 = vcmp.ge.f32.partialorder %v1026_v45, 0.0  ;;  %v1068_v51 = vmul.f32 0.2, %v1026_v45  ;;  %v985_v54 = vmul.f32 %v964_v41, %v932_v49 }
 0x332   :  { %1833 = vmatmul.mubr.msk.bf16.gmra.mxu0 %vm1211_vm7, %v1163_v47  ;;  %v1786_v57 = vpop.f32.mrf.mxu1  ;;  %v1677_v1 = vclamps-f32 %v1109_v48, 256.0 }
 0x333   :  { %v1089_v61 = vsel %vm1047_vm8, %v1026_v45, %v1068_v51  ;;  %v1027_v63 = vadd.f32 %v1006_v50, %v985_v54  ;;  %1836 = vmatprep.mubr.msk.bf16.mxu0 %vm1992_vm2, %v1991_v29 }
 0x334   :  { %v1110_v62 = vmul.f32 0.70710677, %v1089_v61  ;;  %v935_v2 = vpop.f32.mrf.mxu1 }
 0x335   :  { %vm1048_vm9 = vcmp.ge.f32.partialorder %v1027_v63, 0.0  ;;  %v1069_v60 = vmul.f32 0.2, %v1027_v63  ;;  %v986_v4 = vmul.f32 %v965_v59, %v935_v2 }
 0x336   :  { %v1678_v5 = vclamps-f32 %v1110_v62, 256.0  ;;  %v1787_v58 = vpop.f32.mrf.mxu1 }
 0x337   :  { %v1090_v6 = vsel %vm1048_vm9, %v1027_v63, %v1069_v60  ;;  %v1028_v7 = vadd.f32 %v1007_v3, %v986_v4 }
 0x338   :  { %v1111_v8 = vmul.f32 0.70710677, %v1090_v6  ;;  %v1164_v9 = vpack.c.bf16 %v1678_v5, %v1677_v1  ;;  %v940_v10 = vpop.f32.mrf.mxu1 }
 0x339   :  { %vm1049_vm10 = vcmp.ge.f32.partialorder %v1028_v7, 0.0  ;;  %v1070_v53 = vmul.f32 0.2, %v1028_v7  ;;  %v987_v55 = vmul.f32 %v966_v56, %v940_v10 }
 0x33a   :  { %1837 = vmatmul.mubr.msk.bf16.gmra.mxu0 %vm1211_vm7, %v1164_v9  ;;  %v1790_v11 = vpop.f32.mrf.mxu1  ;;  %v1679_v43 = vclamps-f32 %v1111_v8, 256.0 }
 0x33b   :  { %v1091_v12 = vsel %vm1049_vm10, %v1028_v7, %v1070_v53  ;;  %v1029_v13 = vadd.f32 %v1008_v52, %v987_v55  ;;  %1840 = vmatprep.mubr.msk.bf16.mxu0 %vm1992_vm2, %v1991_v29 }
 0x33c   :  { %v1112_v44 = vmul.f32 0.70710677, %v1091_v12  ;;  %v943_v46 = vpop.f32.mrf.mxu1 }
 0x33d   :  { %vm1050_vm11 = vcmp.ge.f32.partialorder %v1029_v13, 0.0  ;;  %v1071_v14 = vmul.f32 0.2, %v1029_v13 }
 0x33e   :  { %v1680_v15 = vclamps-f32 %v1112_v44, 256.0  ;;  %v1791_v16 = vpop.f32.mrf.mxu1 }
 0x33f   :  { %v1092_v17 = vsel %vm1050_vm11, %v1029_v13, %v1071_v14 }
 0x340   :  { %v1113_v18 = vmul.f32 0.70710677, %v1092_v17  ;;  %v1165_v19 = vpack.c.bf16 %v1680_v15, %v1679_v43  ;;  %v1962_v17 = vld [vmem:[%s2691_s8 + $0x10] ss:$8 sps:$4 sm:$0xff]  }
 0x342   :  { %v1681_v20 = vclamps-f32 %v1113_v18, 256.0  ;;  %1841 = vmatmul.mubr.msk.bf16.gmra.mxu0 %vm1211_vm7, %v1165_v19  ;;  %v1968_v18 = vld [vmem:[%s2691_s8] ss:$8 sps:$4 sm:$0xff]   ;;  %v1965_v19 = vld [vmem:[%s2691_s8 + $0x24] ss:$8 sps:$4 sm:$0xff]  }
 0x343   :  { %1844 = vmatprep.mubr.msk.bf16.mxu0 %vm1992_vm2, %v1991_v29  ;;  %vm1436_vm2 = vcmask 1043456  }
 0x344   :  { %v1166_v21 = vpack.c.bf16 %v1681_v20, %v1681_v20  ;;  %v1971_v20 = vld [vmem:[%s2691_s8 + $0x34] ss:$8 sps:$4 sm:$0xff]  }
 0x34a   :  { %1845 = vmatmul.mubr.msk.bf16.gmra.mxu0 %vm1211_vm7, %v1166_v21  ;;  %v1973_v21 = vld [vmem:[%s2691_s8 + $0x30] ss:$8 sps:$4 sm:$0xff]   ;;  %vm1553_vm7 = vcmask 261120  }
 0x34b   :  { %1707 = vmatprep.mubr.msk.bf16.mxu0 %vm1423_vm12, %v1970_v23 }
 0x3ba   :  { %v1282_v24 = vpop.f32.mrf.mxu0 }
 0x3bc   :  { %v1806_v25 = vpop.f32.mrf.mxu0 }
 0x3be   :  { %v1285_v26 = vpop.f32.mrf.mxu0 }
 0x3bf   :  { %v2603_v29 = vpack.c.bf16 %v1285_v26, %v1282_v24 }
 0x3c0   :  { %v1807_v27 = vpop.f32.mrf.mxu0 }
 0x3c2   :  { %v1290_v28 = vpop.f32.mrf.mxu0 }
 0x3c4   :  { %v1810_v30 = vpop.f32.mrf.mxu0 }
 0x3c6   :  { %v1293_v31 = vpop.f32.mrf.mxu0 }
 0x3c7   :  { %v2605_v32 = vpack.c.bf16 %v1293_v31, %v1290_v28 }
 0x3c8   :  { %v1811_v33 = vpop.f32.mrf.mxu0 }
 0x3ca   :  { %v1298_v34 = vpop.f32.mrf.mxu0 }
 0x3cc   :  { %v1814_v35 = vpop.f32.mrf.mxu0 }
 0x3ce   :  { %v1301_v36 = vpop.f32.mrf.mxu0 }
 0x3cf   :  { %v1378_v12 = vpack.c.bf16 %v1301_v36, %v1298_v34 }
 0x3d0   :  { %v1815_v37 = vpop.f32.mrf.mxu0 }
 0x3d2   :  { %v1306_v38 = vpop.f32.mrf.mxu0 }
 0x3d4   :  { %v1818_v39 = vpop.f32.mrf.mxu0 }
 0x3d6   :  { %v1309_v40 = vpop.f32.mrf.mxu0 }
 0x3d7   :  { %v1379_v53 = vpack.c.bf16 %v1309_v40, %v1306_v38 }
 0x3d8   :  { %v1819_v41 = vpop.f32.mrf.mxu0 }
 0x3da   :  { %v1314_v42 = vpop.f32.mrf.mxu0 }
 0x3dc   :  { %v1822_v45 = vpop.f32.mrf.mxu0 }
 0x3de   :  { %v1317_v47 = vpop.f32.mrf.mxu0 }
 0x3df   :  { %v1380_v9 = vpack.c.bf16 %v1317_v47, %v1314_v42 }
 0x3e0   :  { %v1823_v48 = vpop.f32.mrf.mxu0 }
 0x3e2   :  { %v1322_v49 = vpop.f32.mrf.mxu0 }
 0x3e4   :  { %v1826_v50 = vpop.f32.mrf.mxu0 }
 0x3e6   :  { %v1325_v51 = vpop.f32.mrf.mxu0 }
 0x3e7   :  { %v1381_v6 = vpack.c.bf16 %v1325_v51, %v1322_v49 }
 0x3e8   :  { %v1827_v54 = vpop.f32.mrf.mxu0 }
 0x3ea   :  { %v1330_v57 = vpop.f32.mrf.mxu0 }
 0x3ec   :  { %v1830_v59 = vpop.f32.mrf.mxu0 }
 0x3ee   :  { %v1333_v61 = vpop.f32.mrf.mxu0 }
 0x3ef   :  { %v1382_v5 = vpack.c.bf16 %v1333_v61, %v1330_v57 }
 0x3f0   :  { %v1831_v63 = vpop.f32.mrf.mxu0 }
 0x3f2   :  { %v1338_v1 = vpop.f32.mrf.mxu0 }
 0x3f4   :  { %v1834_v62 = vpop.f32.mrf.mxu0 }
 0x3f6   :  { %v1341_v2 = vpop.f32.mrf.mxu0 }
 0x3f7   :  { %v1383_v3 = vpack.c.bf16 %v1341_v2, %v1338_v1 }
 0x3f8   :  { %v1835_v60 = vpop.f32.mrf.mxu0 }
 0x3f9   :  { %1441 = vmatpush1.bf16.msra.mxu0 %v1383_v3  ;;  %1859 = vmatpush1.bf16.msra.mxu1 %v1383_v3 }
 0x3fa   :  { %1442 = vmatprep.subr.bf16.mxu0 %v1990_v0  ;;  %1849 = vmatprep.subr.bf16.mxu1 %v1990_v0  ;;  %v1346_v4 = vpop.f32.mrf.mxu0 }
 0x3fc   :  { %v1838_v58 = vpop.f32.mrf.mxu0 }
 0x3fd   :  { %1443 = vmatpush1.bf16.msra.mxu0 %v1382_v5  ;;  %1860 = vmatpush1.bf16.msra.mxu1 %v1382_v5 }
 0x3fe   :  { %1444 = vmatprep.subr.bf16.mxu0 %v1990_v0  ;;  %1850 = vmatprep.subr.bf16.mxu1 %v1990_v0  ;;  %v1349_v56 = vpop.f32.mrf.mxu0 }
 0x3ff   :  { %v1384_v16 = vpack.c.bf16 %v1349_v56, %v1346_v4 }
 0x400   :  { %v1839_v7 = vpop.f32.mrf.mxu0 }
 0x401   :  { %1445 = vmatpush1.bf16.msra.mxu0 %v1381_v6  ;;  %1861 = vmatpush1.bf16.msra.mxu1 %v1381_v6 }
 0x402   :  { %1446 = vmatprep.subr.bf16.mxu0 %v1990_v0  ;;  %1851 = vmatprep.subr.bf16.mxu1 %v1990_v0  ;;  %v1354_v8 = vpop.f32.mrf.mxu0 }
 0x404   :  { %v1842_v10 = vpop.f32.mrf.mxu0 }
 0x405   :  { %1447 = vmatpush1.bf16.msra.mxu0 %v1380_v9  ;;  %1862 = vmatpush1.bf16.msra.mxu1 %v1380_v9 }
 0x406   :  { %1448 = vmatprep.subr.bf16.mxu0 %v1990_v0  ;;  %1852 = vmatprep.subr.bf16.mxu1 %v1990_v0  ;;  %v1357_v52 = vpop.f32.mrf.mxu0 }
 0x407   :  { %v1385_v15 = vpack.c.bf16 %v1357_v52, %v1354_v8 }
 0x408   :  { %v1843_v55 = vpop.f32.mrf.mxu0 }
 0x409   :  { %1449 = vmatpush1.bf16.msra.mxu0 %v1379_v53  ;;  %1863 = vmatpush1.bf16.msra.mxu1 %v1379_v53 }
 0x40a   :  { %1450 = vmatprep.subr.bf16.mxu0 %v1990_v0  ;;  %1853 = vmatprep.subr.bf16.mxu1 %v1990_v0  ;;  %v1362_v11 = vpop.f32.mrf.mxu0 }
 0x40b   :  { %v1386_v46 = vpack.c.bf16 %v1362_v11, %v1362_v11 }
 0x40c   :  { %v1846_v13 = vpop.f32.mrf.mxu0 }
 0x40d   :  { %1451 = vmatpush1.bf16.msra.mxu0 %v1378_v12  ;;  %1864 = vmatpush1.bf16.msra.mxu1 %v1378_v12  ;;  %v1438_v14 = vsel %vm1436_vm2, %v1386_v46, 0 }
 0x40e   :  { %1452 = vmatprep.subr.bf16.mxu0 %v1990_v0  ;;  %1854 = vmatprep.subr.bf16.mxu1 %v1990_v0  ;;  %v1365_v43 = vpop.f32.mrf.mxu0 }
 0x410   :  { %v1847_v44 = vpop.f32.mrf.mxu0 }
 0x411   :  { %1453 = vmatpush1.bf16.msra.mxu0 %v2605_v32  ;;  %1865 = vmatpush1.bf16.msra.mxu1 %v2605_v32 }
 0x412   :  { %1454 = vmatprep.subr.bf16.mxu0 %v1990_v0  ;;  %1855 = vmatprep.subr.bf16.mxu1 %v1990_v0 }
 0x415   :  { %1455 = vmatpush1.bf16.msra.mxu0 %v2603_v29  ;;  %1866 = vmatpush1.bf16.msra.mxu1 %v2603_v29 }
 0x416   :  { %1466 = vmatprep.subr.bf16.mxu0 %v1990_v0  ;;  %1856 = vmatprep.subr.bf16.mxu1 %v1990_v0 }
 0x419   :  { %1467 = vmatpush2.bf16.msra.mxu0 %v1438_v14  ;;  %1867 = vmatpush2.bf16.msra.mxu1 %v1438_v14 }
 0x41a   :  { %1468 = vmatprep.subr.bf16.mxu0 %v1990_v0  ;;  %1857 = vmatprep.subr.bf16.mxu1 %v1990_v0 }
 0x41d   :  { %1469 = vmatpush2.bf16.msra.mxu0 %v1385_v15  ;;  %1868 = vmatpush2.bf16.msra.mxu1 %v1385_v15 }
 0x41e   :  { %1470 = vmatprep.subr.bf16.mxu0 %v1990_v0  ;;  %1858 = vmatprep.subr.bf16.mxu1 %v1990_v0  ;;  %v1967_v0 = vld [vmem:[%s2691_s8 + $0x20] ss:$8 sps:$4 sm:$0xff]  }
 0x421   :  { %1471 = vmatpush2.bf16.msra.mxu0 %v1384_v16  ;;  %1869 = vmatpush2.bf16.msra.mxu1 %v1384_v16 }
 0x424   :  { %1481 = vmatmul.mubr.bf16.vlgmr.msra.gmra.mxu1 %v1962_v17  ;;  %1473 = vmatmul.mubr.bf16.vlgmr.msra.gmra.mxu0 %v1968_v18 }
 0x425   :  { %1709 = vmatprep.mubr.msk.bf16.mxu1 %vm1423_vm12, %v1965_v19 }
 0x42c   :  { %1489 = vmatmul.mubr.bf16.gmra.mxu1 %v1967_v0 }
 0x42d   :  { %1710 = vmatprep.mubr.msk.bf16.mxu1 %vm1423_vm12, %v1971_v20 }
 0x434   :  { %1497 = vmatmul.mubr.bf16.gmra.mxu1 %v1973_v21 }
 0x4e4   :  { %v1482_v22 = vpop.f32.mrf.mxu1  ;;  %v1474_v23 = vpop.f32.mrf.mxu0 }
 0x4e5   :  { %v1515_v24 = vmul.f32 %v1482_v22, %v1482_v22  ;;  %v1513_v25 = vmul.f32 %v1474_v23, %v1474_v23  ;;  %v1507_v62 = vmul.f32 1.5, %v1482_v22  ;;  %v1505_v60 = vmul.f32 1.5, %v1474_v23 }
 0x4e6   :  { %v1484_v26 = vpop.f32.mrf.mxu1  ;;  %v1476_v29 = vpop.f32.mrf.mxu0 }
 0x4e7   :  { %v1523_v27 = vmul.f32 -0.1, %v1515_v24  ;;  %v1521_v28 = vmul.f32 -0.1, %v1513_v25 }
 0x4e8   :  { %v1485_v30 = vpop.f32.mrf.mxu1  ;;  %v1477_v31 = vpop.f32.mrf.mxu0 }
 0x4e9   :  { %v1533_v32 = vmul.f32 1.442695, %v1523_v27  ;;  %v1516_v33 = vmul.f32 %v1485_v30, %v1485_v30  ;;  %v1529_v34 = vmul.f32 1.442695, %v1521_v28  ;;  %v1514_v36 = vmul.f32 %v1477_v31, %v1477_v31 }
 0x4ea   :  { %v1487_v35 = vpop.f32.mrf.mxu1  ;;  %v1479_v37 = vpop.f32.mrf.mxu0  ;;  %v1508_v9 = vmul.f32 1.5, %v1485_v30  ;;  %v1506_v53 = vmul.f32 1.5, %v1477_v31 }
 0x4eb   :  { %1974 = vpow2.f32 %v1533_v32  ;;  %v1524_v38 = vmul.f32 -0.1, %v1516_v33  ;;  %v1522_v40 = vmul.f32 -0.1, %v1514_v36 }
 0x4ec   :  { %v1490_v39 = vpop.f32.mrf.mxu1  ;;  %1976 = vpow2.f32 %v1529_v34 }
 0x4ed   :  { %v1535_v41 = vmul.f32 1.442695, %v1524_v38  ;;  %v1517_v42 = vmul.f32 %v1490_v39, %v1490_v39  ;;  %v1531_v47 = vmul.f32 1.442695, %v1522_v40  ;;  %v1509_v43 = vmul.f32 1.5, %v1490_v39 }
 0x4ee   :  { %v1492_v45 = vpop.f32.mrf.mxu1 }
 0x4ef   :  { %1978 = vpow2.f32 %v1535_v41  ;;  %v1525_v48 = vmul.f32 -0.1, %v1517_v42 }
 0x4f0   :  { %v1493_v49 = vpop.f32.mrf.mxu1  ;;  %1980 = vpow2.f32 %v1531_v47 }
 0x4f1   :  { %v1537_v50 = vmul.f32 1.442695, %v1525_v48  ;;  %v1518_v51 = vmul.f32 %v1493_v49, %v1493_v49  ;;  %v1510_v14 = vmul.f32 1.5, %v1493_v49 }
 0x4f2   :  { %v1495_v54 = vpop.f32.mrf.mxu1 }
 0x4f3   :  { %1982 = vpow2.f32 %v1537_v50  ;;  %v1526_v57 = vmul.f32 -0.1, %v1518_v51 }
 0x4f4   :  { %v1498_v59 = vpop.f32.mrf.mxu1 }
 0x4f5   :  { %v1539_v61 = vmul.f32 1.442695, %v1526_v57  ;;  %v1519_v63 = vmul.f32 %v1498_v59, %v1498_v59  ;;  %v1511_v17 = vmul.f32 1.5, %v1498_v59 }
 0x4f6   :  { %v1500_v1 = vpop.f32.mrf.mxu1 }
 0x4f7   :  { %1984 = vpow2.f32 %v1539_v61  ;;  %v1527_v2 = vmul.f32 -0.1, %v1519_v63 }
 0x4f8   :  { %v1975_v3 = vpop.eup %1974  ;;  %v1501_v4 = vpop.f32.mrf.mxu1 }
 0x4f9   :  { %v1977_v5 = vpop.eup %1976  ;;  %v1547_v58 = vmul.f32 %v1975_v3, %v1507_v62  ;;  %v1541_v56 = vmul.f32 1.442695, %v1527_v2  ;;  %v1520_v6 = vmul.f32 %v1501_v4, %v1501_v4  ;;  %v1512_v0 = vmul.f32 1.5, %v1501_v4 }
 0x4fa   :  { %v1545_v7 = vmul.f32 %v1977_v5, %v1505_v60  ;;  %v1503_v8 = vpop.f32.mrf.mxu1 }
 0x4fb   :  { %1556 = vst.msk [vmem:[%s2692_s9 + $0x10] sm:$0xff] %vm1553_vm7, %v1547_v58  ;;  %1986 = vpow2.f32 %v1541_v56  ;;  %v1528_v10 = vmul.f32 -0.1, %v1520_v6 }
 0x4fc   :  { %v1979_v52 = vpop.eup %1978  ;;  %1554 = vst.msk [vmem:[%s2692_s9] sm:$0xff] %vm1553_vm7, %v1545_v7 }
 0x4fd   :  { %v1981_v55 = vpop.eup %1980  ;;  %v1548_v11 = vmul.f32 %v1979_v52, %v1508_v9  ;;  %v1543_v12 = vmul.f32 1.442695, %v1528_v10 }
 0x4fe   :  { %v1546_v13 = vmul.f32 %v1981_v55, %v1506_v53 }
 0x4ff   :  { %1557 = vst.msk [vmem:[%s2692_s9 + $0x18] sm:$0xff] %vm1553_vm7, %v1548_v11  ;;  %1988 = vpow2.f32 %v1543_v12 }
 0x500   :  { %v1983_v44 = vpop.eup %1982  ;;  %1555 = vst.msk [vmem:[%s2692_s9 + $0x8] sm:$0xff] %vm1553_vm7, %v1546_v13 }
 0x501   :  { %v1549_v46 = vmul.f32 %v1983_v44, %v1509_v43 }
 0x503   :  { %1558 = vst.msk [vmem:[%s2692_s9 + $0x20] sm:$0xff] %vm1553_vm7, %v1549_v46 }
 0x504   :  { %v1985_v15 = vpop.eup %1984 }
 0x505   :  { %v1550_v16 = vmul.f32 %v1985_v15, %v1510_v14 }
 0x507   :  { %1559 = vst.msk [vmem:[%s2692_s9 + $0x28] sm:$0xff] %vm1553_vm7, %v1550_v16 }
 0x508   :  { %v1987_v18 = vpop.eup %1986 }
 0x509   :  { %v1551_v19 = vmul.f32 %v1987_v18, %v1511_v17 }
 0x50b   :  { %1560 = vst.msk [vmem:[%s2692_s9 + $0x30] sm:$0xff] %vm1553_vm7, %v1551_v19 }
 0x50c   :  { %v1989_v20 = vpop.eup %1988 }
 0x50d   :  { %v1552_v21 = vmul.f32 %v1989_v20, %v1512_v0 }
 0x50f   :  { %1561 = vst.msk [vmem:[%s2692_s9 + $0x38] sm:$0xff] %vm1553_vm7, %v1552_v21 }

</bundles_post_ra>
